<compile_context>
chip_gen: v7x
topology: tpu7x:2x2x1
jax: 0.10.0
libtpu: 0.0.40
codegen_flags: <defaults>
</compile_context>

<pallas_src>
import functools

import jax
import jax.numpy as jnp
from jax.experimental import pallas as pl
from jax.experimental.pallas import tpu as pltpu

_BN_EPS = 1e-5


def _vmem_limit():
    """Scoped-VMEM budget: ~3/4 of physical VMEM (48 MiB v7x, 96 MiB v5e/v6e)."""
    try:
        cap = pltpu.get_tpu_info().vmem_capacity_bytes
    except Exception:
        cap = 64 * 1024 * 1024          # conservative fallback
    return int(min(cap * 3 // 4, 96 * 1024 * 1024))


def _mosaic_params(vmem_limit, *semantics):
    return pltpu.CompilerParams(dimension_semantics=tuple(semantics),
                                vmem_limit_bytes=vmem_limit)


def _cout_tile(c):
    """Output-channel tile: full C when small, else 256-lane (v6e/v7x MXU width)
    or 128-lane tiles."""
    if c <= 256:
        return c
    if c % 256 == 0:
        return 256
    if c % 128 == 0:
        return 128
    return c


def _row_tile(ho, wo, c, itemsize, target_bytes=4 << 20):
    """Largest row tile (divisor of ho, multiple of 8, or ho itself) <= ~4 MiB."""
    if ho % 8 != 0:
        return ho
    best, t = 8, 8
    while t <= ho:
        if ho % t == 0 and t * wo * c * itemsize <= target_bytes:
            best = t
        t += 8
    return best


# --------------------------- shared kernel helpers ---------------------------
def _zero_border(xpad_ref):
    """Zero only the 1-pixel halo border of the padded scratch (interior is
    always overwritten), saving a full-tile vector store per grid step."""
    hp, wp, c = xpad_ref.shape
    z_row = jnp.zeros((1, wp, c), xpad_ref.dtype)
    z_col = jnp.zeros((hp - 2, 1, c), xpad_ref.dtype)
    xpad_ref[0:1, :, :] = z_row
    xpad_ref[hp - 1:hp, :, :] = z_row
    xpad_ref[1:hp - 1, 0:1, :] = z_col
    xpad_ref[1:hp - 1, wp - 1:wp, :] = z_col


def _conv3x3(get_patch, w_ref, col_ref, ho, wo, cin):
    """3x3 conv of a zero-padded (ho+2, wo+2, cin) tile against w_ref (9*cin, TC).

    Small cin : materialized im2col + ONE long-K MXU matmul (col_ref provided).
    Large cin : 9 accumulated K=cin matmuls straight from the padded tile -- no
                im2col scratch, no 9x full-slab VMEM stores."""
    if col_ref is not None:
        for k in range(9):
            dy, dx = divmod(k, 3)
            col_ref[:, :, k * cin:(k + 1) * cin] = \
                get_patch(dy, dx).astype(col_ref.dtype)
        col = col_ref[...].reshape(ho * wo, 9 * cin)
        return jnp.dot(col, w_ref[...], preferred_element_type=jnp.float32)
    acc = None
    for k in range(9):
        dy, dx = divmod(k, 3)
        patch = get_patch(dy, dx).reshape(ho * wo, cin).astype(w_ref.dtype)
        part = jnp.dot(patch, w_ref[k * cin:(k + 1) * cin, :],
                       preferred_element_type=jnp.float32)
        acc = part if acc is None else acc + part
    return acc


def _write_partial_stats(stats_ref, acc):
    """Per-image partial per-channel [sum; sum_sq] (f32), no cross-step carry."""
    s = jnp.sum(acc, axis=0, keepdims=True)          # (1, TC)
    ss = jnp.sum(acc * acc, axis=0, keepdims=True)   # (1, TC)
    stats_ref[:, 0:1, :] = s[None].astype(stats_ref.dtype)
    stats_ref[:, 1:2, :] = ss[None].astype(stats_ref.dtype)


def _bn_fold(stats_sum, g, b, inv_count):
    """Fold training-mode (biased) batch-norm into per-channel scale/shift."""
    mean = stats_sum[0:1, :] * inv_count
    var = stats_sum[1:2, :] * inv_count - mean * mean
    scale = g * jax.lax.rsqrt(var + _BN_EPS)
    shift = b - mean * scale
    return scale, shift


# --------------- pass A: pool + pad + conv1 + partial stats ------------------
def _pool_conv1_kernel(x_ref, w_ref, y_ref, stats_ref, xpad_ref, *col):
    # x_ref    : (1, 2*Ho, Wo, 2*Cin)  raw input, W-pairs pre-folded onto lanes
    # w_ref    : (9*Cin, TC)           conv1 weights flattened (ky,kx,ci)
    # y_ref    : (1, Ho, Wo, TC)       raw conv1 output (pre-BN, compute dtype)
    # stats_ref: (1, 2, TC)            per-image partial [sum; sum_sq] (f32)
    # xpad_ref : (Ho+2, Wo+2, Cin)     zero-padded pooled tile (halo in VMEM)
    col_ref = col[0] if col else None
    _, h2, wo, c2 = x_ref.shape
    ho, cin = h2 // 2, c2 // 2

    # Fused 2x2 max-pool: three elementwise (VPU) maxes on lane-dense views.
    xr = x_ref[...].reshape(ho, 2, wo, c2)            # leading-dim split only
    m = jnp.maximum(xr[:, 0], xr[:, 1])               # vertical pair
    pooled = jnp.maximum(m[..., :cin], m[..., cin:])  # horizontal pair (lanes)

    _zero_border(xpad_ref)
    xpad_ref[1:ho + 1, 1:wo + 1, :] = pooled.astype(xpad_ref.dtype)

    acc = _conv3x3(lambda dy, dx: xpad_ref[dy:dy + ho, dx:dx + wo, :],
                   w_ref, col_ref, ho, wo, cin)
    # conv bias omitted: cancelled exactly by training-mode BN mean subtraction.
    y_ref[...] = acc.reshape(1, ho, wo, acc.shape[-1]).astype(y_ref.dtype)
    _write_partial_stats(stats_ref, acc)


# --------- pass C: BN1 fold + ReLU + pad (fused) + conv2 + partial stats -----
def _bn1_conv2_kernel(y1_ref, s1_ref, g_ref, b_ref, w_ref, y2_ref, s2_ref,
                      xpad_ref, *col, inv_count):
    # y1_ref : (1, Ho, Wo, Cmid)  conv1 raw output
    # s1_ref : (N, 2, Cmid)       per-image partial stats (reduced here)
    # w_ref  : (9*Cmid, TC)       conv2 weights flattened
    col_ref = col[0] if col else None
    _, ho, wo, cin = y1_ref.shape

    scale, shift = _bn_fold(jnp.sum(s1_ref[...], axis=0),
                            g_ref[...], b_ref[...], inv_count)
    act = jnp.maximum(
        y1_ref[0].astype(jnp.float32) * scale.reshape(1, 1, cin)
        + shift.reshape(1, 1, cin), 0.0)

    _zero_border(xpad_ref)
    xpad_ref[1:ho + 1, 1:wo + 1, :] = act.astype(xpad_ref.dtype)

    acc = _conv3x3(lambda dy, dx: xpad_ref[dy:dy + ho, dx:dx + wo, :],
                   w_ref, col_ref, ho, wo, cin)
    y2_ref[...] = acc.reshape(1, ho, wo, acc.shape[-1]).astype(y2_ref.dtype)
    _write_partial_stats(s2_ref, acc)


# -------------------- pass D: BN2 fold + ReLU (row-tiled) --------------------
def _bn_relu_kernel(y_ref, stats_ref, g_ref, b_ref, o_ref, *, inv_count):
    c = y_ref.shape[-1]
    scale, shift = _bn_fold(jnp.sum(stats_ref[...], axis=0),
                            g_ref[...], b_ref[...], inv_count)
    o_ref[...] = jnp.maximum(
        y_ref[...].astype(jnp.float32) * scale.reshape(1, 1, 1, c)
        + shift.reshape(1, 1, 1, c), 0.0).astype(o_ref.dtype)


# ------------------------------- Down module ---------------------------------
def init_down_params(key, in_channels, out_channels):
    mid = out_channels
    k1, k2, k3, k4 = jax.random.split(key, 4)

    def conv_init(kw, kb, cin, cout):
        fan_in = cin * 9
        bound = 1.0 / (fan_in ** 0.5)
        w = jax.random.uniform(kw, (3, 3, cin, cout), jnp.float32, -bound, bound)
        b = jax.random.uniform(kb, (cout,), jnp.float32, -bound, bound)
        return w, b

    w1, b1 = conv_init(k1, k2, in_channels, mid)
    w2, b2 = conv_init(k3, k4, mid, out_channels)
    return dict(
        w1=w1, b1=b1, g1=jnp.ones((mid,), jnp.float32),
        be1=jnp.zeros((mid,), jnp.float32),
        w2=w2, b2=b2, g2=jnp.ones((out_channels,), jnp.float32),
        be2=jnp.zeros((out_channels,), jnp.float32),
    )


def down_forward(x_nchw, p, compute_dtype=jnp.bfloat16):
    """MaxPool2d(2) -> (Conv3x3 -> BN(train) -> ReLU) x 2. NCHW in / NCHW out."""
    n, cin, h, w = x_nchw.shape
    assert h % 2 == 0 and w % 2 == 0, "MaxPool2d(2) path assumes even H and W"
    ho, wo = h // 2, w // 2
    cmid = p['w1'].shape[-1]
    cout = p['w2'].shape[-1]
    itemsize = jnp.dtype(compute_dtype).itemsize

    # Cast BEFORE the layout transpose (halves its HBM traffic); max-pool
    # commutes with rounding so the early cast is exact for the pooled values.
    x = jnp.transpose(x_nchw.astype(compute_dtype), (0, 2, 3, 1))   # NCHW -> NHWC
    x_r = x.reshape(n, h, wo, 2 * cin)          # fold W-pairs onto lanes (metadata)

    w1_2d = p['w1'].reshape(9 * cin, cmid).astype(compute_dtype)
    w2_2d = p['w2'].reshape(9 * cmid, cout).astype(compute_dtype)
    g1 = p['g1'].reshape(1, cmid).astype(jnp.float32)
    be1 = p['be1'].reshape(1, cmid).astype(jnp.float32)
    g2 = p['g2'].reshape(1, cout).astype(jnp.float32)
    be2 = p['be2'].reshape(1, cout).astype(jnp.float32)

    inv_count = 1.0 / float(n * ho * wo)
    vmem_limit = _vmem_limit()

    # ---- pass A: fused pool + pad + conv1 + per-image partial stats ----------
    tc1 = _cout_tile(cmid)
    scratch_a = [pltpu.VMEM((ho + 2, wo + 2, cin), compute_dtype)]
    if cin < 128:                                     # im2col only for small Cin
        scratch_a.append(pltpu.VMEM((ho, wo, 9 * cin), compute_dtype))
    y1, stats1 = pl.pallas_call(
        _pool_conv1_kernel,
        grid=(cmid // tc1, n),
        in_specs=[
            pl.BlockSpec((1, h, wo, 2 * cin), lambda j, b: (b, 0, 0, 0)),
            pl.BlockSpec((9 * cin, tc1), lambda j, b: (0, j)),
        ],
        out_specs=[
            pl.BlockSpec((1, ho, wo, tc1), lambda j, b: (b, 0, 0, j)),
            pl.BlockSpec((1, 2, tc1), lambda j, b: (b, 0, j)),
        ],
        out_shape=[
            jax.ShapeDtypeStruct((n, ho, wo, cmid), compute_dtype),
            jax.ShapeDtypeStruct((n, 2, cmid), jnp.float32),
        ],
        scratch_shapes=scratch_a,
        compiler_params=_mosaic_params(vmem_limit, "parallel", "parallel"),
    )(x_r, w1_2d)

    # ---- pass C: BN1 fold + ReLU + pad (fused) + conv2 + partial stats -------
    tc2 = _cout_tile(cout)
    scratch_c = [pltpu.VMEM((ho + 2, wo + 2, cmid), compute_dtype)]
    if cmid < 128:
        scratch_c.append(pltpu.VMEM((ho, wo, 9 * cmid), compute_dtype))
    y2, stats2 = pl.pallas_call(
        functools.partial(_bn1_conv2_kernel, inv_count=inv_count),
        grid=(cout // tc2, n),
        in_specs=[
            pl.BlockSpec((1, ho, wo, cmid), lambda j, b: (b, 0, 0, 0)),
            pl.BlockSpec((n, 2, cmid), lambda j, b: (0, 0, 0)),
            pl.BlockSpec((1, cmid), lambda j, b: (0, 0)),
            pl.BlockSpec((1, cmid), lambda j, b: (0, 0)),
            pl.BlockSpec((9 * cmid, tc2), lambda j, b: (0, j)),
        ],
        out_specs=[
            pl.BlockSpec((1, ho, wo, tc2), lambda j, b: (b, 0, 0, j)),
            pl.BlockSpec((1, 2, tc2), lambda j, b: (b, 0, j)),
        ],
        out_shape=[
            jax.ShapeDtypeStruct((n, ho, wo, cout), compute_dtype),
            jax.ShapeDtypeStruct((n, 2, cout), jnp.float32),
        ],
        scratch_shapes=scratch_c,
        compiler_params=_mosaic_params(vmem_limit, "parallel", "parallel"),
    )(y1, stats1, g1, be1, w2_2d)

    # ---- pass D: BN2 fold + ReLU (large row tiles, fully parallel grid) ------
    tr = _row_tile(ho, wo, cout, itemsize)
    out_nhwc = pl.pallas_call(
        functools.partial(_bn_relu_kernel, inv_count=inv_count),
        grid=(n, ho // tr),
        in_specs=[
            pl.BlockSpec((1, tr, wo, cout), lambda b, r: (b, r, 0, 0)),
            pl.BlockSpec((n, 2, cout), lambda b, r: (0, 0, 0)),
            pl.BlockSpec((1, cout), lambda b, r: (0, 0)),
            pl.BlockSpec((1, cout), lambda b, r: (0, 0)),
        ],
        out_specs=pl.BlockSpec((1, tr, wo, cout), lambda b, r: (b, r, 0, 0)),
        out_shape=jax.ShapeDtypeStruct((n, ho, wo, cout), compute_dtype),
        compiler_params=_mosaic_params(vmem_limit, "parallel", "parallel"),
    )(y2, stats2, g2, be2)

    return jnp.transpose(out_nhwc, (0, 3, 1, 2))               # NHWC -> NCHW


# ------------------------------ pure-JAX reference ----------------------------
def down_reference(x_nchw, p):
    x = jnp.transpose(x_nchw, (0, 2, 3, 1))
    x = jax.lax.reduce_window(x, -jnp.inf, jax.lax.max,
                              (1, 2, 2, 1), (1, 2, 2, 1), 'VALID')

    def cbr(x, w, b, g, be):
        y = jax.lax.conv_general_dilated(
            x, w, (1, 1), 'SAME',
            dimension_numbers=('NHWC', 'HWIO', 'NHWC'),
            preferred_element_type=jnp.float32)
        y = y + b
        mean = jnp.mean(y, axis=(0, 1, 2), keepdims=True)
        var = jnp.mean((y - mean) ** 2, axis=(0, 1, 2), keepdims=True)
        y = (y - mean) * jax.lax.rsqrt(var + _BN_EPS) * g + be
        return jnp.maximum(y, 0.0)

    x = cbr(x, p['w1'], p['b1'], p['g1'], p['be1'])
    x = cbr(x, p['w2'], p['b2'], p['g2'], p['be2'])
    return jnp.transpose(x, (0, 3, 1, 2))


if __name__ == "__main__":
    key = jax.random.PRNGKey(0)
    kx, kp = jax.random.split(key)

    in_channels, out_channels = 4, 8
    x = jax.random.normal(kx, (2, in_channels, 16, 16), jnp.float32)    # NCHW
    params = init_down_params(kp, in_channels, out_channels)

    ref_f32 = jax.block_until_ready(down_reference(x, params))

    # Strict correctness check: full-f32 compute/intermediate path.
    out_f32 = jax.block_until_ready(
        jax.jit(lambda a, b: down_forward(a, b, jnp.float32))(x, params))
    assert out_f32.shape == (2, out_channels, 8, 8), out_f32.shape
    assert jnp.allclose(out_f32, ref_f32, atol=3e-4, rtol=3e-4), \
        float(jnp.max(jnp.abs(out_f32 - ref_f32)))

    # Performance path: bf16 operands/intermediates, f32 accumulation & stats.
    out_bf16 = jax.block_until_ready(
        jax.jit(lambda a, b: down_forward(a, b, jnp.bfloat16))(x, params))
    assert out_bf16.shape == (2, out_channels, 8, 8), out_bf16.shape
    diff = jnp.abs(out_bf16.astype(jnp.float32) - ref_f32)
    assert jnp.allclose(out_bf16.astype(jnp.float32), ref_f32,
                        atol=1e-1, rtol=1e-1), float(jnp.max(diff))

    print("KERNEL_OK")
</pallas_src>

<mosaic_0001>
module attributes {stable_mosaic.version = 11 : i64} {
  func.func @_pool_conv1_kernel(%arg0: i32, %arg1: i32, %arg2: memref<1x16x8x8xf32, #tpu.memory_space<vmem>>, %arg3: memref<36x8xf32, #tpu.memory_space<vmem>>, %arg4: memref<1x8x8x8xf32, #tpu.memory_space<vmem>>, %arg5: memref<1x2x8xf32, #tpu.memory_space<vmem>>, %arg6: memref<10x10x4xf32, #tpu.memory_space<vmem>>, %arg7: memref<8x8x36xf32, #tpu.memory_space<vmem>>) attributes {dimension_semantics = [#tpu.dimension_semantics<parallel>, #tpu.dimension_semantics<parallel>], iteration_bounds = array<i64: 1, 2>, scalar_prefetch = 0 : i64, scratch_operands = 2 : i64, tpu.core_type = #tpu.core_type<tc>, window_params = [{transform_indices = @transform_0, window_bounds = array<i64: 1, 16, 8, 8>}, {transform_indices = @transform_1, window_bounds = array<i64: 36, 8>}, {transform_indices = @transform_2, window_bounds = array<i64: 1, 8, 8, 8>}, {transform_indices = @transform_3, window_bounds = array<i64: 1, 2, 8>}]} {
    %c0 = arith.constant 0 : index
    %c0_0 = arith.constant 0 : index
    %c0_1 = arith.constant 0 : index
    %c0_2 = arith.constant 0 : index
    %0 = vector.load %arg2[%c0, %c0_0, %c0_1, %c0_2] : memref<1x16x8x8xf32, #tpu.memory_space<vmem>>, vector<1x16x8x8xf32>
    %1 = vector.shape_cast %0 : vector<1x16x8x8xf32> to vector<8x2x8x8xf32>
    %2 = vector.extract_strided_slice %1 {offsets = [0, 0, 0, 0], sizes = [8, 1, 8, 8], strides = [1, 1, 1, 1]} : vector<8x2x8x8xf32> to vector<8x1x8x8xf32>
    %3 = vector.shape_cast %2 : vector<8x1x8x8xf32> to vector<8x8x8xf32>
    %4 = vector.extract_strided_slice %1 {offsets = [0, 1, 0, 0], sizes = [8, 1, 8, 8], strides = [1, 1, 1, 1]} : vector<8x2x8x8xf32> to vector<8x1x8x8xf32>
    %5 = vector.shape_cast %4 : vector<8x1x8x8xf32> to vector<8x8x8xf32>
    %6 = arith.maximumf %3, %5 : vector<8x8x8xf32>
    %7 = vector.extract_strided_slice %6 {offsets = [0, 0, 0], sizes = [8, 8, 4], strides = [1, 1, 1]} : vector<8x8x8xf32> to vector<8x8x4xf32>
    %8 = vector.extract_strided_slice %6 {offsets = [0, 0, 4], sizes = [8, 8, 4], strides = [1, 1, 1]} : vector<8x8x8xf32> to vector<8x8x4xf32>
    %9 = arith.maximumf %7, %8 : vector<8x8x4xf32>
    %cst = arith.constant 0.000000e+00 : f32
    %10 = vector.broadcast %cst : f32 to vector<1x10x4xf32>
    %cst_3 = arith.constant 0.000000e+00 : f32
    %11 = vector.broadcast %cst_3 : f32 to vector<8x1x4xf32>
    %c0_4 = arith.constant 0 : index
    %c0_5 = arith.constant 0 : index
    %c0_6 = arith.constant 0 : index
    %12 = vector.load %arg6[%c0_4, %c0_5, %c0_6] : memref<10x10x4xf32, #tpu.memory_space<vmem>>, vector<1x10x4xf32>
    tpu.vector_store %arg6[%c0_4, %c0_5, %c0_6], %10 {strides = array<i32>} : memref<10x10x4xf32, #tpu.memory_space<vmem>>, vector<1x10x4xf32>,
    %c9 = arith.constant 9 : index
    %c0_7 = arith.constant 0 : index
    %c0_8 = arith.constant 0 : index
    %13 = vector.load %arg6[%c9, %c0_7, %c0_8] : memref<10x10x4xf32, #tpu.memory_space<vmem>>, vector<1x10x4xf32>
    tpu.vector_store %arg6[%c9, %c0_7, %c0_8], %10 {strides = array<i32>} : memref<10x10x4xf32, #tpu.memory_space<vmem>>, vector<1x10x4xf32>,
    %c1 = arith.constant 1 : index
    %c0_9 = arith.constant 0 : index
    %c0_10 = arith.constant 0 : index
    %14 = vector.load %arg6[%c1, %c0_9, %c0_10] : memref<10x10x4xf32, #tpu.memory_space<vmem>>, vector<8x1x4xf32>
    tpu.vector_store %arg6[%c1, %c0_9, %c0_10], %11 {strides = array<i32>} : memref<10x10x4xf32, #tpu.memory_space<vmem>>, vector<8x1x4xf32>,
    %c1_11 = arith.constant 1 : index
    %c9_12 = arith.constant 9 : index
    %c0_13 = arith.constant 0 : index
    %15 = vector.load %arg6[%c1_11, %c9_12, %c0_13] : memref<10x10x4xf32, #tpu.memory_space<vmem>>, vector<8x1x4xf32>
    tpu.vector_store %arg6[%c1_11, %c9_12, %c0_13], %11 {strides = array<i32>} : memref<10x10x4xf32, #tpu.memory_space<vmem>>, vector<8x1x4xf32>,
    %c1_14 = arith.constant 1 : index
    %c1_15 = arith.constant 1 : index
    %c0_16 = arith.constant 0 : index
    %16 = vector.load %arg6[%c1_14, %c1_15, %c0_16] : memref<10x10x4xf32, #tpu.memory_space<vmem>>, vector<8x8x4xf32>
    tpu.vector_store %arg6[%c1_14, %c1_15, %c0_16], %9 {strides = array<i32>} : memref<10x10x4xf32, #tpu.memory_space<vmem>>, vector<8x8x4xf32>,
    %c0_17 = arith.constant 0 : index
    %c0_18 = arith.constant 0 : index
    %c0_19 = arith.constant 0 : index
    %17 = vector.load %arg6[%c0_17, %c0_18, %c0_19] : memref<10x10x4xf32, #tpu.memory_space<vmem>>, vector<8x8x4xf32>
    %c0_20 = arith.constant 0 : index
    %c0_21 = arith.constant 0 : index
    %c0_22 = arith.constant 0 : index
    %18 = vector.load %arg7[%c0_20, %c0_21, %c0_22] : memref<8x8x36xf32, #tpu.memory_space<vmem>>, vector<8x8x4xf32>
    tpu.vector_store %arg7[%c0_20, %c0_21, %c0_22], %17 {strides = array<i32>} : memref<8x8x36xf32, #tpu.memory_space<vmem>>, vector<8x8x4xf32>,
    %c0_23 = arith.constant 0 : index
    %c1_24 = arith.constant 1 : index
    %c0_25 = arith.constant 0 : index
    %19 = vector.load %arg6[%c0_23, %c1_24, %c0_25] : memref<10x10x4xf32, #tpu.memory_space<vmem>>, vector<8x8x4xf32>
    %c0_26 = arith.constant 0 : index
    %c0_27 = arith.constant 0 : index
    %c4 = arith.constant 4 : index
    %20 = vector.load %arg7[%c0_26, %c0_27, %c4] : memref<8x8x36xf32, #tpu.memory_space<vmem>>, vector<8x8x4xf32>
    tpu.vector_store %arg7[%c0_26, %c0_27, %c4], %19 {strides = array<i32>} : memref<8x8x36xf32, #tpu.memory_space<vmem>>, vector<8x8x4xf32>,
    %c0_28 = arith.constant 0 : index
    %c2 = arith.constant 2 : index
    %c0_29 = arith.constant 0 : index
    %21 = vector.load %arg6[%c0_28, %c2, %c0_29] : memref<10x10x4xf32, #tpu.memory_space<vmem>>, vector<8x8x4xf32>
    %c0_30 = arith.constant 0 : index
    %c0_31 = arith.constant 0 : index
    %c8 = arith.constant 8 : index
    %22 = vector.load %arg7[%c0_30, %c0_31, %c8] : memref<8x8x36xf32, #tpu.memory_space<vmem>>, vector<8x8x4xf32>
    tpu.vector_store %arg7[%c0_30, %c0_31, %c8], %21 {strides = array<i32>} : memref<8x8x36xf32, #tpu.memory_space<vmem>>, vector<8x8x4xf32>,
    %c1_32 = arith.constant 1 : index
    %c0_33 = arith.constant 0 : index
    %c0_34 = arith.constant 0 : index
    %23 = vector.load %arg6[%c1_32, %c0_33, %c0_34] : memref<10x10x4xf32, #tpu.memory_space<vmem>>, vector<8x8x4xf32>
    %c0_35 = arith.constant 0 : index
    %c0_36 = arith.constant 0 : index
    %c12 = arith.constant 12 : index
    %24 = vector.load %arg7[%c0_35, %c0_36, %c12] : memref<8x8x36xf32, #tpu.memory_space<vmem>>, vector<8x8x4xf32>
    tpu.vector_store %arg7[%c0_35, %c0_36, %c12], %23 {strides = array<i32>} : memref<8x8x36xf32, #tpu.memory_space<vmem>>, vector<8x8x4xf32>,
    %c1_37 = arith.constant 1 : index
    %c1_38 = arith.constant 1 : index
    %c0_39 = arith.constant 0 : index
    %25 = vector.load %arg6[%c1_37, %c1_38, %c0_39] : memref<10x10x4xf32, #tpu.memory_space<vmem>>, vector<8x8x4xf32>
    %c0_40 = arith.constant 0 : index
    %c0_41 = arith.constant 0 : index
    %c16 = arith.constant 16 : index
    %26 = vector.load %arg7[%c0_40, %c0_41, %c16] : memref<8x8x36xf32, #tpu.memory_space<vmem>>, vector<8x8x4xf32>
    tpu.vector_store %arg7[%c0_40, %c0_41, %c16], %25 {strides = array<i32>} : memref<8x8x36xf32, #tpu.memory_space<vmem>>, vector<8x8x4xf32>,
    %c1_42 = arith.constant 1 : index
    %c2_43 = arith.constant 2 : index
    %c0_44 = arith.constant 0 : index
    %27 = vector.load %arg6[%c1_42, %c2_43, %c0_44] : memref<10x10x4xf32, #tpu.memory_space<vmem>>, vector<8x8x4xf32>
    %c0_45 = arith.constant 0 : index
    %c0_46 = arith.constant 0 : index
    %c20 = arith.constant 20 : index
    %28 = vector.load %arg7[%c0_45, %c0_46, %c20] : memref<8x8x36xf32, #tpu.memory_space<vmem>>, vector<8x8x4xf32>
    tpu.vector_store %arg7[%c0_45, %c0_46, %c20], %27 {strides = array<i32>} : memref<8x8x36xf32, #tpu.memory_space<vmem>>, vector<8x8x4xf32>,
    %c2_47 = arith.constant 2 : index
    %c0_48 = arith.constant 0 : index
    %c0_49 = arith.constant 0 : index
    %29 = vector.load %arg6[%c2_47, %c0_48, %c0_49] : memref<10x10x4xf32, #tpu.memory_space<vmem>>, vector<8x8x4xf32>
    %c0_50 = arith.constant 0 : index
    %c0_51 = arith.constant 0 : index
    %c24 = arith.constant 24 : index
    %30 = vector.load %arg7[%c0_50, %c0_51, %c24] : memref<8x8x36xf32, #tpu.memory_space<vmem>>, vector<8x8x4xf32>
    tpu.vector_store %arg7[%c0_50, %c0_51, %c24], %29 {strides = array<i32>} : memref<8x8x36xf32, #tpu.memory_space<vmem>>, vector<8x8x4xf32>,
    %c2_52 = arith.constant 2 : index
    %c1_53 = arith.constant 1 : index
    %c0_54 = arith.constant 0 : index
    %31 = vector.load %arg6[%c2_52, %c1_53, %c0_54] : memref<10x10x4xf32, #tpu.memory_space<vmem>>, vector<8x8x4xf32>
    %c0_55 = arith.constant 0 : index
    %c0_56 = arith.constant 0 : index
    %c28 = arith.constant 28 : index
    %32 = vector.load %arg7[%c0_55, %c0_56, %c28] : memref<8x8x36xf32, #tpu.memory_space<vmem>>, vector<8x8x4xf32>
    tpu.vector_store %arg7[%c0_55, %c0_56, %c28], %31 {strides = array<i32>} : memref<8x8x36xf32, #tpu.memory_space<vmem>>, vector<8x8x4xf32>,
    %c2_57 = arith.constant 2 : index
    %c2_58 = arith.constant 2 : index
    %c0_59 = arith.constant 0 : index
    %33 = vector.load %arg6[%c2_57, %c2_58, %c0_59] : memref<10x10x4xf32, #tpu.memory_space<vmem>>, vector<8x8x4xf32>
    %c0_60 = arith.constant 0 : index
    %c0_61 = arith.constant 0 : index
    %c32 = arith.constant 32 : index
    %34 = vector.load %arg7[%c0_60, %c0_61, %c32] : memref<8x8x36xf32, #tpu.memory_space<vmem>>, vector<8x8x4xf32>
    tpu.vector_store %arg7[%c0_60, %c0_61, %c32], %33 {strides = array<i32>} : memref<8x8x36xf32, #tpu.memory_space<vmem>>, vector<8x8x4xf32>,
    %c0_62 = arith.constant 0 : index
    %c0_63 = arith.constant 0 : index
    %c0_64 = arith.constant 0 : index
    %35 = vector.load %arg7[%c0_62, %c0_63, %c0_64] : memref<8x8x36xf32, #tpu.memory_space<vmem>>, vector<8x8x36xf32>
    %36 = vector.shape_cast %35 : vector<8x8x36xf32> to vector<64x36xf32>
    %c0_65 = arith.constant 0 : index
    %c0_66 = arith.constant 0 : index
    %37 = vector.load %arg3[%c0_65, %c0_66] : memref<36x8xf32, #tpu.memory_space<vmem>>, vector<36x8xf32>
    %cst_67 = arith.constant dense<0.000000e+00> : vector<64x8xf32>
    %38 = tpu.matmul %36, %37, %cst_67 {dimension_numbers = #tpu.dot_dimension_numbers<[1], [0], [0], [1], [0, 0, 1, 1], [], []>} : vector<64x36xf32>, vector<36x8xf32>, vector<64x8xf32> -> vector<64x8xf32>
    %39 = vector.shape_cast %38 : vector<64x8xf32> to vector<1x8x8x8xf32>
    %c0_68 = arith.constant 0 : index
    %c0_69 = arith.constant 0 : index
    %c0_70 = arith.constant 0 : index
    %c0_71 = arith.constant 0 : index
    %40 = vector.load %arg4[%c0_68, %c0_69, %c0_70, %c0_71] : memref<1x8x8x8xf32, #tpu.memory_space<vmem>>, vector<1x8x8x8xf32>
    tpu.vector_store %arg4[%c0_68, %c0_69, %c0_70, %c0_71], %39 {strides = array<i32>} : memref<1x8x8x8xf32, #tpu.memory_space<vmem>>, vector<1x8x8x8xf32>,
    %cst_72 = arith.constant dense<0.000000e+00> : vector<8xf32>
    %41 = vector.multi_reduction <add>, %38, %cst_72 [0] : vector<64x8xf32> to vector<8xf32>
    %42 = vector.shape_cast %41 : vector<8xf32> to vector<1x8xf32>
    %43 = arith.mulf %38, %38 : vector<64x8xf32>
    %cst_73 = arith.constant dense<0.000000e+00> : vector<8xf32>
    %44 = vector.multi_reduction <add>, %43, %cst_73 [0] : vector<64x8xf32> to vector<8xf32>
    %45 = vector.shape_cast %44 : vector<8xf32> to vector<1x8xf32>
    %46 = vector.shape_cast %42 : vector<1x8xf32> to vector<1x1x8xf32>
    %c0_74 = arith.constant 0 : index
    %c0_75 = arith.constant 0 : index
    %c0_76 = arith.constant 0 : index
    %47 = vector.load %arg5[%c0_74, %c0_75, %c0_76] : memref<1x2x8xf32, #tpu.memory_space<vmem>>, vector<1x1x8xf32>
    tpu.vector_store %arg5[%c0_74, %c0_75, %c0_76], %46 {strides = array<i32>} : memref<1x2x8xf32, #tpu.memory_space<vmem>>, vector<1x1x8xf32>,
    %48 = vector.shape_cast %45 : vector<1x8xf32> to vector<1x1x8xf32>
    %c0_77 = arith.constant 0 : index
    %c1_78 = arith.constant 1 : index
    %c0_79 = arith.constant 0 : index
    %49 = vector.load %arg5[%c0_77, %c1_78, %c0_79] : memref<1x2x8xf32, #tpu.memory_space<vmem>>, vector<1x1x8xf32>
    tpu.vector_store %arg5[%c0_77, %c1_78, %c0_79], %48 {strides = array<i32>} : memref<1x2x8xf32, #tpu.memory_space<vmem>>, vector<1x1x8xf32>,
    return
  }
  func.func @transform_0(%arg0: i32, %arg1: i32) -> (i32, i32, i32, i32) {
    %c0_i32 = arith.constant 0 : i32
    %c0_i32_0 = arith.constant 0 : i32
    %c0_i32_1 = arith.constant 0 : i32
    %c0_i32_2 = arith.constant 0 : i32
    return %arg1, %c0_i32, %c0_i32_0, %c0_i32_1 : i32, i32, i32, i32
  }
  func.func @transform_1(%arg0: i32, %arg1: i32) -> (i32, i32) {
    %c0_i32 = arith.constant 0 : i32
    %c0_i32_0 = arith.constant 0 : i32
    return %c0_i32, %arg0 : i32, i32
  }
  func.func @transform_2(%arg0: i32, %arg1: i32) -> (i32, i32, i32, i32) {
    %c0_i32 = arith.constant 0 : i32
    %c0_i32_0 = arith.constant 0 : i32
    %c0_i32_1 = arith.constant 0 : i32
    return %arg1, %c0_i32, %c0_i32_0, %arg0 : i32, i32, i32, i32
  }
  func.func @transform_3(%arg0: i32, %arg1: i32) -> (i32, i32, i32) {
    %c0_i32 = arith.constant 0 : i32
    %c0_i32_0 = arith.constant 0 : i32
    return %arg1, %c0_i32, %arg0 : i32, i32, i32
  }
}

module attributes {stable_mosaic.version = 11 : i64} {
  func.func @_bn_relu_kernel(%arg0: i32, %arg1: i32, %arg2: memref<1x8x8x8xf32, #tpu.memory_space<vmem>>, %arg3: memref<2x2x8xf32, #tpu.memory_space<vmem>>, %arg4: memref<1x8xf32, #tpu.memory_space<vmem>>, %arg5: memref<1x8xf32, #tpu.memory_space<vmem>>, %arg6: memref<1x8x8x8xf32, #tpu.memory_space<vmem>>) attributes {dimension_semantics = [#tpu.dimension_semantics<parallel>, #tpu.dimension_semantics<parallel>], iteration_bounds = array<i64: 2, 1>, scalar_prefetch = 0 : i64, scratch_operands = 0 : i64, tpu.core_type = #tpu.core_type<tc>, window_params = [{transform_indices = @transform_0, window_bounds = array<i64: 1, 8, 8, 8>}, {pipeline_mode = #tpu.pipeline_mode<synchronous>, transform_indices = @transform_1, window_bounds = array<i64: 2, 2, 8>}, {pipeline_mode = #tpu.pipeline_mode<synchronous>, transform_indices = @transform_2, window_bounds = array<i64: 1, 8>}, {pipeline_mode = #tpu.pipeline_mode<synchronous>, transform_indices = @transform_3, window_bounds = array<i64: 1, 8>}, {transform_indices = @transform_4, window_bounds = array<i64: 1, 8, 8, 8>}]} {
    %c0 = arith.constant 0 : index
    %c0_0 = arith.constant 0 : index
    %c0_1 = arith.constant 0 : index
    %0 = vector.load %arg3[%c0, %c0_0, %c0_1] : memref<2x2x8xf32, #tpu.memory_space<vmem>>, vector<2x2x8xf32>
    %cst = arith.constant dense<0.000000e+00> : vector<2x8xf32>
    %1 = vector.multi_reduction <add>, %0, %cst [0] : vector<2x2x8xf32> to vector<2x8xf32>
    %c0_2 = arith.constant 0 : index
    %c0_3 = arith.constant 0 : index
    %2 = vector.load %arg4[%c0_2, %c0_3] : memref<1x8xf32, #tpu.memory_space<vmem>>, vector<1x8xf32>
    %c0_4 = arith.constant 0 : index
    %c0_5 = arith.constant 0 : index
    %3 = vector.load %arg5[%c0_4, %c0_5] : memref<1x8xf32, #tpu.memory_space<vmem>>, vector<1x8xf32>
    %4 = vector.extract_strided_slice %1 {offsets = [0, 0], sizes = [1, 8], strides = [1, 1]} : vector<2x8xf32> to vector<1x8xf32>
    %cst_6 = arith.constant 7.812500e-03 : f32
    %5 = vector.broadcast %cst_6 : f32 to vector<1x8xf32>
    %6 = arith.mulf %4, %5 : vector<1x8xf32>
    %7 = vector.extract_strided_slice %1 {offsets = [1, 0], sizes = [1, 8], strides = [1, 1]} : vector<2x8xf32> to vector<1x8xf32>
    %cst_7 = arith.constant 7.812500e-03 : f32
    %8 = vector.broadcast %cst_7 : f32 to vector<1x8xf32>
    %9 = arith.mulf %7, %8 : vector<1x8xf32>
    %10 = arith.mulf %6, %6 : vector<1x8xf32>
    %11 = arith.subf %9, %10 : vector<1x8xf32>
    %cst_8 = arith.constant 9.99999974E-6 : f32
    %12 = vector.broadcast %cst_8 : f32 to vector<1x8xf32>
    %13 = arith.addf %11, %12 : vector<1x8xf32>
    %14 = math.rsqrt %13 : vector<1x8xf32>
    %15 = arith.mulf %2, %14 : vector<1x8xf32>
    %16 = arith.mulf %6, %15 : vector<1x8xf32>
    %17 = arith.subf %3, %16 : vector<1x8xf32>
    %c0_9 = arith.constant 0 : index
    %c0_10 = arith.constant 0 : index
    %c0_11 = arith.constant 0 : index
    %c0_12 = arith.constant 0 : index
    %18 = vector.load %arg2[%c0_9, %c0_10, %c0_11, %c0_12] : memref<1x8x8x8xf32, #tpu.memory_space<vmem>>, vector<1x8x8x8xf32>
    %19 = vector.shape_cast %15 : vector<1x8xf32> to vector<1x1x1x8xf32>
    %20 = vector.broadcast %19 : vector<1x1x1x8xf32> to vector<1x8x8x8xf32>
    %21 = arith.mulf %18, %20 : vector<1x8x8x8xf32>
    %22 = vector.shape_cast %17 : vector<1x8xf32> to vector<1x1x1x8xf32>
    %23 = vector.broadcast %22 : vector<1x1x1x8xf32> to vector<1x8x8x8xf32>
    %24 = arith.addf %21, %23 : vector<1x8x8x8xf32>
    %cst_13 = arith.constant 0.000000e+00 : f32
    %25 = vector.broadcast %cst_13 : f32 to vector<1x8x8x8xf32>
    %26 = arith.maximumf %24, %25 : vector<1x8x8x8xf32>
    %c0_14 = arith.constant 0 : index
    %c0_15 = arith.constant 0 : index
    %c0_16 = arith.constant 0 : index
    %c0_17 = arith.constant 0 : index
    %27 = vector.load %arg6[%c0_14, %c0_15, %c0_16, %c0_17] : memref<1x8x8x8xf32, #tpu.memory_space<vmem>>, vector<1x8x8x8xf32>
    tpu.vector_store %arg6[%c0_14, %c0_15, %c0_16, %c0_17], %26 {strides = array<i32>} : memref<1x8x8x8xf32, #tpu.memory_space<vmem>>, vector<1x8x8x8xf32>,
    return
  }
  func.func @transform_0(%arg0: i32, %arg1: i32) -> (i32, i32, i32, i32) {
    %c0_i32 = arith.constant 0 : i32
    %c0_i32_0 = arith.constant 0 : i32
    %c0_i32_1 = arith.constant 0 : i32
    return %arg0, %arg1, %c0_i32, %c0_i32_0 : i32, i32, i32, i32
  }
  func.func @transform_1(%arg0: i32, %arg1: i32) -> (i32, i32, i32) {
    %c0_i32 = arith.constant 0 : i32
    %c0_i32_0 = arith.constant 0 : i32
    %c0_i32_1 = arith.constant 0 : i32
    %c0_i32_2 = arith.constant 0 : i32
    return %c0_i32, %c0_i32_0, %c0_i32_1 : i32, i32, i32
  }
  func.func @transform_2(%arg0: i32, %arg1: i32) -> (i32, i32) {
    %c0_i32 = arith.constant 0 : i32
    %c0_i32_0 = arith.constant 0 : i32
    %c0_i32_1 = arith.constant 0 : i32
    return %c0_i32, %c0_i32_0 : i32, i32
  }
  func.func @transform_3(%arg0: i32, %arg1: i32) -> (i32, i32) {
    %c0_i32 = arith.constant 0 : i32
    %c0_i32_0 = arith.constant 0 : i32
    %c0_i32_1 = arith.constant 0 : i32
    return %c0_i32, %c0_i32_0 : i32, i32
  }
  func.func @transform_4(%arg0: i32, %arg1: i32) -> (i32, i32, i32, i32) {
    %c0_i32 = arith.constant 0 : i32
    %c0_i32_0 = arith.constant 0 : i32
    %c0_i32_1 = arith.constant 0 : i32
    return %arg0, %arg1, %c0_i32, %c0_i32_0 : i32, i32, i32, i32
  }
}

module attributes {stable_mosaic.version = 11 : i64} {
  func.func @_bn1_conv2_kernel(%arg0: i32, %arg1: i32, %arg2: memref<1x8x8x8xf32, #tpu.memory_space<vmem>>, %arg3: memref<2x2x8xf32, #tpu.memory_space<vmem>>, %arg4: memref<1x8xf32, #tpu.memory_space<vmem>>, %arg5: memref<1x8xf32, #tpu.memory_space<vmem>>, %arg6: memref<72x8xf32, #tpu.memory_space<vmem>>, %arg7: memref<1x8x8x8xf32, #tpu.memory_space<vmem>>, %arg8: memref<1x2x8xf32, #tpu.memory_space<vmem>>, %arg9: memref<10x10x8xf32, #tpu.memory_space<vmem>>, %arg10: memref<8x8x72xf32, #tpu.memory_space<vmem>>) attributes {dimension_semantics = [#tpu.dimension_semantics<parallel>, #tpu.dimension_semantics<parallel>], iteration_bounds = array<i64: 1, 2>, scalar_prefetch = 0 : i64, scratch_operands = 2 : i64, tpu.core_type = #tpu.core_type<tc>, window_params = [{transform_indices = @transform_0, window_bounds = array<i64: 1, 8, 8, 8>}, {pipeline_mode = #tpu.pipeline_mode<synchronous>, transform_indices = @transform_1, window_bounds = array<i64: 2, 2, 8>}, {pipeline_mode = #tpu.pipeline_mode<synchronous>, transform_indices = @transform_2, window_bounds = array<i64: 1, 8>}, {pipeline_mode = #tpu.pipeline_mode<synchronous>, transform_indices = @transform_3, window_bounds = array<i64: 1, 8>}, {transform_indices = @transform_4, window_bounds = array<i64: 72, 8>}, {transform_indices = @transform_5, window_bounds = array<i64: 1, 8, 8, 8>}, {transform_indices = @transform_6, window_bounds = array<i64: 1, 2, 8>}]} {
    %c0 = arith.constant 0 : index
    %c0_0 = arith.constant 0 : index
    %c0_1 = arith.constant 0 : index
    %0 = vector.load %arg3[%c0, %c0_0, %c0_1] : memref<2x2x8xf32, #tpu.memory_space<vmem>>, vector<2x2x8xf32>
    %cst = arith.constant dense<0.000000e+00> : vector<2x8xf32>
    %1 = vector.multi_reduction <add>, %0, %cst [0] : vector<2x2x8xf32> to vector<2x8xf32>
    %c0_2 = arith.constant 0 : index
    %c0_3 = arith.constant 0 : index
    %2 = vector.load %arg4[%c0_2, %c0_3] : memref<1x8xf32, #tpu.memory_space<vmem>>, vector<1x8xf32>
    %c0_4 = arith.constant 0 : index
    %c0_5 = arith.constant 0 : index
    %3 = vector.load %arg5[%c0_4, %c0_5] : memref<1x8xf32, #tpu.memory_space<vmem>>, vector<1x8xf32>
    %4 = vector.extract_strided_slice %1 {offsets = [0, 0], sizes = [1, 8], strides = [1, 1]} : vector<2x8xf32> to vector<1x8xf32>
    %cst_6 = arith.constant 7.812500e-03 : f32
    %5 = vector.broadcast %cst_6 : f32 to vector<1x8xf32>
    %6 = arith.mulf %4, %5 : vector<1x8xf32>
    %7 = vector.extract_strided_slice %1 {offsets = [1, 0], sizes = [1, 8], strides = [1, 1]} : vector<2x8xf32> to vector<1x8xf32>
    %cst_7 = arith.constant 7.812500e-03 : f32
    %8 = vector.broadcast %cst_7 : f32 to vector<1x8xf32>
    %9 = arith.mulf %7, %8 : vector<1x8xf32>
    %10 = arith.mulf %6, %6 : vector<1x8xf32>
    %11 = arith.subf %9, %10 : vector<1x8xf32>
    %cst_8 = arith.constant 9.99999974E-6 : f32
    %12 = vector.broadcast %cst_8 : f32 to vector<1x8xf32>
    %13 = arith.addf %11, %12 : vector<1x8xf32>
    %14 = math.rsqrt %13 : vector<1x8xf32>
    %15 = arith.mulf %2, %14 : vector<1x8xf32>
    %16 = arith.mulf %6, %15 : vector<1x8xf32>
    %17 = arith.subf %3, %16 : vector<1x8xf32>
    %c0_9 = arith.constant 0 : index
    %c0_10 = arith.constant 0 : index
    %c0_11 = arith.constant 0 : index
    %c0_12 = arith.constant 0 : index
    %18 = vector.load %arg2[%c0_9, %c0_10, %c0_11, %c0_12] : memref<1x8x8x8xf32, #tpu.memory_space<vmem>>, vector<1x8x8x8xf32>
    %19 = vector.shape_cast %18 : vector<1x8x8x8xf32> to vector<8x8x8xf32>
    %20 = vector.shape_cast %15 : vector<1x8xf32> to vector<1x1x8xf32>
    %21 = vector.broadcast %20 : vector<1x1x8xf32> to vector<8x8x8xf32>
    %22 = arith.mulf %19, %21 : vector<8x8x8xf32>
    %23 = vector.shape_cast %17 : vector<1x8xf32> to vector<1x1x8xf32>
    %24 = vector.broadcast %23 : vector<1x1x8xf32> to vector<8x8x8xf32>
    %25 = arith.addf %22, %24 : vector<8x8x8xf32>
    %cst_13 = arith.constant 0.000000e+00 : f32
    %26 = vector.broadcast %cst_13 : f32 to vector<8x8x8xf32>
    %27 = arith.maximumf %25, %26 : vector<8x8x8xf32>
    %cst_14 = arith.constant 0.000000e+00 : f32
    %28 = vector.broadcast %cst_14 : f32 to vector<1x10x8xf32>
    %cst_15 = arith.constant 0.000000e+00 : f32
    %29 = vector.broadcast %cst_15 : f32 to vector<8x1x8xf32>
    %c0_16 = arith.constant 0 : index
    %c0_17 = arith.constant 0 : index
    %c0_18 = arith.constant 0 : index
    %30 = vector.load %arg9[%c0_16, %c0_17, %c0_18] : memref<10x10x8xf32, #tpu.memory_space<vmem>>, vector<1x10x8xf32>
    tpu.vector_store %arg9[%c0_16, %c0_17, %c0_18], %28 {strides = array<i32>} : memref<10x10x8xf32, #tpu.memory_space<vmem>>, vector<1x10x8xf32>,
    %c9 = arith.constant 9 : index
    %c0_19 = arith.constant 0 : index
    %c0_20 = arith.constant 0 : index
    %31 = vector.load %arg9[%c9, %c0_19, %c0_20] : memref<10x10x8xf32, #tpu.memory_space<vmem>>, vector<1x10x8xf32>
    tpu.vector_store %arg9[%c9, %c0_19, %c0_20], %28 {strides = array<i32>} : memref<10x10x8xf32, #tpu.memory_space<vmem>>, vector<1x10x8xf32>,
    %c1 = arith.constant 1 : index
    %c0_21 = arith.constant 0 : index
    %c0_22 = arith.constant 0 : index
    %32 = vector.load %arg9[%c1, %c0_21, %c0_22] : memref<10x10x8xf32, #tpu.memory_space<vmem>>, vector<8x1x8xf32>
    tpu.vector_store %arg9[%c1, %c0_21, %c0_22], %29 {strides = array<i32>} : memref<10x10x8xf32, #tpu.memory_space<vmem>>, vector<8x1x8xf32>,
    %c1_23 = arith.constant 1 : index
    %c9_24 = arith.constant 9 : index
    %c0_25 = arith.constant 0 : index
    %33 = vector.load %arg9[%c1_23, %c9_24, %c0_25] : memref<10x10x8xf32, #tpu.memory_space<vmem>>, vector<8x1x8xf32>
    tpu.vector_store %arg9[%c1_23, %c9_24, %c0_25], %29 {strides = array<i32>} : memref<10x10x8xf32, #tpu.memory_space<vmem>>, vector<8x1x8xf32>,
    %c1_26 = arith.constant 1 : index
    %c1_27 = arith.constant 1 : index
    %c0_28 = arith.constant 0 : index
    %34 = vector.load %arg9[%c1_26, %c1_27, %c0_28] : memref<10x10x8xf32, #tpu.memory_space<vmem>>, vector<8x8x8xf32>
    tpu.vector_store %arg9[%c1_26, %c1_27, %c0_28], %27 {strides = array<i32>} : memref<10x10x8xf32, #tpu.memory_space<vmem>>, vector<8x8x8xf32>,
    %c0_29 = arith.constant 0 : index
    %c0_30 = arith.constant 0 : index
    %c0_31 = arith.constant 0 : index
    %35 = vector.load %arg9[%c0_29, %c0_30, %c0_31] : memref<10x10x8xf32, #tpu.memory_space<vmem>>, vector<8x8x8xf32>
    %c0_32 = arith.constant 0 : index
    %c0_33 = arith.constant 0 : index
    %c0_34 = arith.constant 0 : index
    %36 = vector.load %arg10[%c0_32, %c0_33, %c0_34] : memref<8x8x72xf32, #tpu.memory_space<vmem>>, vector<8x8x8xf32>
    tpu.vector_store %arg10[%c0_32, %c0_33, %c0_34], %35 {strides = array<i32>} : memref<8x8x72xf32, #tpu.memory_space<vmem>>, vector<8x8x8xf32>,
    %c0_35 = arith.constant 0 : index
    %c1_36 = arith.constant 1 : index
    %c0_37 = arith.constant 0 : index
    %37 = vector.load %arg9[%c0_35, %c1_36, %c0_37] : memref<10x10x8xf32, #tpu.memory_space<vmem>>, vector<8x8x8xf32>
    %c0_38 = arith.constant 0 : index
    %c0_39 = arith.constant 0 : index
    %c8 = arith.constant 8 : index
    %38 = vector.load %arg10[%c0_38, %c0_39, %c8] : memref<8x8x72xf32, #tpu.memory_space<vmem>>, vector<8x8x8xf32>
    tpu.vector_store %arg10[%c0_38, %c0_39, %c8], %37 {strides = array<i32>} : memref<8x8x72xf32, #tpu.memory_space<vmem>>, vector<8x8x8xf32>,
    %c0_40 = arith.constant 0 : index
    %c2 = arith.constant 2 : index
    %c0_41 = arith.constant 0 : index
    %39 = vector.load %arg9[%c0_40, %c2, %c0_41] : memref<10x10x8xf32, #tpu.memory_space<vmem>>, vector<8x8x8xf32>
    %c0_42 = arith.constant 0 : index
    %c0_43 = arith.constant 0 : index
    %c16 = arith.constant 16 : index
    %40 = vector.load %arg10[%c0_42, %c0_43, %c16] : memref<8x8x72xf32, #tpu.memory_space<vmem>>, vector<8x8x8xf32>
    tpu.vector_store %arg10[%c0_42, %c0_43, %c16], %39 {strides = array<i32>} : memref<8x8x72xf32, #tpu.memory_space<vmem>>, vector<8x8x8xf32>,
    %c1_44 = arith.constant 1 : index
    %c0_45 = arith.constant 0 : index
    %c0_46 = arith.constant 0 : index
    %41 = vector.load %arg9[%c1_44, %c0_45, %c0_46] : memref<10x10x8xf32, #tpu.memory_space<vmem>>, vector<8x8x8xf32>
    %c0_47 = arith.constant 0 : index
    %c0_48 = arith.constant 0 : index
    %c24 = arith.constant 24 : index
    %42 = vector.load %arg10[%c0_47, %c0_48, %c24] : memref<8x8x72xf32, #tpu.memory_space<vmem>>, vector<8x8x8xf32>
    tpu.vector_store %arg10[%c0_47, %c0_48, %c24], %41 {strides = array<i32>} : memref<8x8x72xf32, #tpu.memory_space<vmem>>, vector<8x8x8xf32>,
    %c1_49 = arith.constant 1 : index
    %c1_50 = arith.constant 1 : index
    %c0_51 = arith.constant 0 : index
    %43 = vector.load %arg9[%c1_49, %c1_50, %c0_51] : memref<10x10x8xf32, #tpu.memory_space<vmem>>, vector<8x8x8xf32>
    %c0_52 = arith.constant 0 : index
    %c0_53 = arith.constant 0 : index
    %c32 = arith.constant 32 : index
    %44 = vector.load %arg10[%c0_52, %c0_53, %c32] : memref<8x8x72xf32, #tpu.memory_space<vmem>>, vector<8x8x8xf32>
    tpu.vector_store %arg10[%c0_52, %c0_53, %c32], %43 {strides = array<i32>} : memref<8x8x72xf32, #tpu.memory_space<vmem>>, vector<8x8x8xf32>,
    %c1_54 = arith.constant 1 : index
    %c2_55 = arith.constant 2 : index
    %c0_56 = arith.constant 0 : index
    %45 = vector.load %arg9[%c1_54, %c2_55, %c0_56] : memref<10x10x8xf32, #tpu.memory_space<vmem>>, vector<8x8x8xf32>
    %c0_57 = arith.constant 0 : index
    %c0_58 = arith.constant 0 : index
    %c40 = arith.constant 40 : index
    %46 = vector.load %arg10[%c0_57, %c0_58, %c40] : memref<8x8x72xf32, #tpu.memory_space<vmem>>, vector<8x8x8xf32>
    tpu.vector_store %arg10[%c0_57, %c0_58, %c40], %45 {strides = array<i32>} : memref<8x8x72xf32, #tpu.memory_space<vmem>>, vector<8x8x8xf32>,
    %c2_59 = arith.constant 2 : index
    %c0_60 = arith.constant 0 : index
    %c0_61 = arith.constant 0 : index
    %47 = vector.load %arg9[%c2_59, %c0_60, %c0_61] : memref<10x10x8xf32, #tpu.memory_space<vmem>>, vector<8x8x8xf32>
    %c0_62 = arith.constant 0 : index
    %c0_63 = arith.constant 0 : index
    %c48 = arith.constant 48 : index
    %48 = vector.load %arg10[%c0_62, %c0_63, %c48] : memref<8x8x72xf32, #tpu.memory_space<vmem>>, vector<8x8x8xf32>
    tpu.vector_store %arg10[%c0_62, %c0_63, %c48], %47 {strides = array<i32>} : memref<8x8x72xf32, #tpu.memory_space<vmem>>, vector<8x8x8xf32>,
    %c2_64 = arith.constant 2 : index
    %c1_65 = arith.constant 1 : index
    %c0_66 = arith.constant 0 : index
    %49 = vector.load %arg9[%c2_64, %c1_65, %c0_66] : memref<10x10x8xf32, #tpu.memory_space<vmem>>, vector<8x8x8xf32>
    %c0_67 = arith.constant 0 : index
    %c0_68 = arith.constant 0 : index
    %c56 = arith.constant 56 : index
    %50 = vector.load %arg10[%c0_67, %c0_68, %c56] : memref<8x8x72xf32, #tpu.memory_space<vmem>>, vector<8x8x8xf32>
    tpu.vector_store %arg10[%c0_67, %c0_68, %c56], %49 {strides = array<i32>} : memref<8x8x72xf32, #tpu.memory_space<vmem>>, vector<8x8x8xf32>,
    %c2_69 = arith.constant 2 : index
    %c2_70 = arith.constant 2 : index
    %c0_71 = arith.constant 0 : index
    %51 = vector.load %arg9[%c2_69, %c2_70, %c0_71] : memref<10x10x8xf32, #tpu.memory_space<vmem>>, vector<8x8x8xf32>
    %c0_72 = arith.constant 0 : index
    %c0_73 = arith.constant 0 : index
    %c64 = arith.constant 64 : index
    %52 = vector.load %arg10[%c0_72, %c0_73, %c64] : memref<8x8x72xf32, #tpu.memory_space<vmem>>, vector<8x8x8xf32>
    tpu.vector_store %arg10[%c0_72, %c0_73, %c64], %51 {strides = array<i32>} : memref<8x8x72xf32, #tpu.memory_space<vmem>>, vector<8x8x8xf32>,
    %c0_74 = arith.constant 0 : index
    %c0_75 = arith.constant 0 : index
    %c0_76 = arith.constant 0 : index
    %53 = vector.load %arg10[%c0_74, %c0_75, %c0_76] : memref<8x8x72xf32, #tpu.memory_space<vmem>>, vector<8x8x72xf32>
    %54 = vector.shape_cast %53 : vector<8x8x72xf32> to vector<64x72xf32>
    %c0_77 = arith.constant 0 : index
    %c0_78 = arith.constant 0 : index
    %55 = vector.load %arg6[%c0_77, %c0_78] : memref<72x8xf32, #tpu.memory_space<vmem>>, vector<72x8xf32>
    %cst_79 = arith.constant dense<0.000000e+00> : vector<64x8xf32>
    %56 = tpu.matmul %54, %55, %cst_79 {dimension_numbers = #tpu.dot_dimension_numbers<[1], [0], [0], [1], [0, 0, 1, 1], [], []>} : vector<64x72xf32>, vector<72x8xf32>, vector<64x8xf32> -> vector<64x8xf32>
    %57 = vector.shape_cast %56 : vector<64x8xf32> to vector<1x8x8x8xf32>
    %c0_80 = arith.constant 0 : index
    %c0_81 = arith.constant 0 : index
    %c0_82 = arith.constant 0 : index
    %c0_83 = arith.constant 0 : index
    %58 = vector.load %arg7[%c0_80, %c0_81, %c0_82, %c0_83] : memref<1x8x8x8xf32, #tpu.memory_space<vmem>>, vector<1x8x8x8xf32>
    tpu.vector_store %arg7[%c0_80, %c0_81, %c0_82, %c0_83], %57 {strides = array<i32>} : memref<1x8x8x8xf32, #tpu.memory_space<vmem>>, vector<1x8x8x8xf32>,
    %cst_84 = arith.constant dense<0.000000e+00> : vector<8xf32>
    %59 = vector.multi_reduction <add>, %56, %cst_84 [0] : vector<64x8xf32> to vector<8xf32>
    %60 = vector.shape_cast %59 : vector<8xf32> to vector<1x8xf32>
    %61 = arith.mulf %56, %56 : vector<64x8xf32>
    %cst_85 = arith.constant dense<0.000000e+00> : vector<8xf32>
    %62 = vector.multi_reduction <add>, %61, %cst_85 [0] : vector<64x8xf32> to vector<8xf32>
    %63 = vector.shape_cast %62 : vector<8xf32> to vector<1x8xf32>
    %64 = vector.shape_cast %60 : vector<1x8xf32> to vector<1x1x8xf32>
    %c0_86 = arith.constant 0 : index
    %c0_87 = arith.constant 0 : index
    %c0_88 = arith.constant 0 : index
    %65 = vector.load %arg8[%c0_86, %c0_87, %c0_88] : memref<1x2x8xf32, #tpu.memory_space<vmem>>, vector<1x1x8xf32>
    tpu.vector_store %arg8[%c0_86, %c0_87, %c0_88], %64 {strides = array<i32>} : memref<1x2x8xf32, #tpu.memory_space<vmem>>, vector<1x1x8xf32>,
    %66 = vector.shape_cast %63 : vector<1x8xf32> to vector<1x1x8xf32>
    %c0_89 = arith.constant 0 : index
    %c1_90 = arith.constant 1 : index
    %c0_91 = arith.constant 0 : index
    %67 = vector.load %arg8[%c0_89, %c1_90, %c0_91] : memref<1x2x8xf32, #tpu.memory_space<vmem>>, vector<1x1x8xf32>
    tpu.vector_store %arg8[%c0_89, %c1_90, %c0_91], %66 {strides = array<i32>} : memref<1x2x8xf32, #tpu.memory_space<vmem>>, vector<1x1x8xf32>,
    return
  }
  func.func @transform_0(%arg0: i32, %arg1: i32) -> (i32, i32, i32, i32) {
    %c0_i32 = arith.constant 0 : i32
    %c0_i32_0 = arith.constant 0 : i32
    %c0_i32_1 = arith.constant 0 : i32
    %c0_i32_2 = arith.constant 0 : i32
    return %arg1, %c0_i32, %c0_i32_0, %c0_i32_1 : i32, i32, i32, i32
  }
  func.func @transform_1(%arg0: i32, %arg1: i32) -> (i32, i32, i32) {
    %c0_i32 = arith.constant 0 : i32
    %c0_i32_0 = arith.constant 0 : i32
    %c0_i32_1 = arith.constant 0 : i32
    %c0_i32_2 = arith.constant 0 : i32
    return %c0_i32, %c0_i32_0, %c0_i32_1 : i32, i32, i32
  }
  func.func @transform_2(%arg0: i32, %arg1: i32) -> (i32, i32) {
    %c0_i32 = arith.constant 0 : i32
    %c0_i32_0 = arith.constant 0 : i32
    %c0_i32_1 = arith.constant 0 : i32
    return %c0_i32, %c0_i32_0 : i32, i32
  }
  func.func @transform_3(%arg0: i32, %arg1: i32) -> (i32, i32) {
    %c0_i32 = arith.constant 0 : i32
    %c0_i32_0 = arith.constant 0 : i32
    %c0_i32_1 = arith.constant 0 : i32
    return %c0_i32, %c0_i32_0 : i32, i32
  }
  func.func @transform_4(%arg0: i32, %arg1: i32) -> (i32, i32) {
    %c0_i32 = arith.constant 0 : i32
    %c0_i32_0 = arith.constant 0 : i32
    return %c0_i32, %arg0 : i32, i32
  }
  func.func @transform_5(%arg0: i32, %arg1: i32) -> (i32, i32, i32, i32) {
    %c0_i32 = arith.constant 0 : i32
    %c0_i32_0 = arith.constant 0 : i32
    %c0_i32_1 = arith.constant 0 : i32
    return %arg1, %c0_i32, %c0_i32_0, %arg0 : i32, i32, i32, i32
  }
  func.func @transform_6(%arg0: i32, %arg1: i32) -> (i32, i32, i32) {
    %c0_i32 = arith.constant 0 : i32
    %c0_i32_0 = arith.constant 0 : i32
    return %arg1, %c0_i32, %arg0 : i32, i32, i32
  }
}

</mosaic_0001>

<bundles_post_ra>
// kernel: _lambda_.5
= control target key start
LH: loop header
LB: loop body
LE: loop exit
PB: predicated region body
PF: predicated region fallthrough
CT: control target
= control target key end

     0   :  { %s503_s15 = smov 0   ;;  %s505_s16 = smov 0   ;;  %s563_s0 = inlined_call_operand.vmem [shape: f32[2,8,8,8], index: 0, kind: input, shape index: {}]   ;;  %s564_s1 = inlined_call_operand.vmem [shape: f32[2,2,8], index: 1, kind: input, shape index: {}]   ;;  %s565_s2 = inlined_call_operand.vmem [shape: f32[1,8], index: 2, kind: input, shape index: {}]   ;;  %s566_s3 = inlined_call_operand.vmem [shape: f32[1,8], index: 3, kind: input, shape index: {}]   ;;  %s567_s4 = inlined_call_operand.vmem [shape: f32[2,8,8,8], index: 4, kind: output, shape index: {}]  }
   0x1   :  { %s507_s17 = smov 0  }
   0x2 LB: > { %s26_s18 = sadd.s32 1, %s471_s16  ;;  %p417_p0 = scmp.ge.s32.totalorder %s475_s17, 1  ;;  %s475_s17 = sphi %s507_s17, %s14_s17   ;;  %s471_s16 = sphi %s505_s16, %s569_s16   ;;  %s467_s15 = sphi %s503_s15, %s568_s15  }
   0x3   : > { %p28_p1 = scmp.ge.s32.totalorder %s26_s18, 2  ;;  %p183_p2 = scmp.lt.s32.totalorder %s475_s17, 3 }
   0x5   : > { %s571_s18 = smov (%p28_p1, %s26_s18), 0  ;;  %p184_p3 = pnand %p417_p0, %p183_p2 }
   0x6   : > { %v237_v0 = vld [vmem:[%s564_s1] sm:$0x3] (!%p184_p3)  ;;  %v238_v1 = vld [vmem:[%s564_s1 + $0x2] sm:$0x3] (!%p184_p3)  ;;  %vm239_vm0 = vcmask (!%p184_p3), 58368   ;;  %v257_v12 = vlaneseq (!%p184_p3)  ;;  %p218_p4 = scmp.lt.s32.totalorder (!%p184_p3), %s467_s15, 1 }
   0x7   : > { %187 = sbr.rel (%p184_p3) target bundleno = 53 (0x35), region = 36  ;;  %v240_v2 = vsel (!%p184_p3), %vm239_vm0, %v237_v0, 0.0  ;;  %v241_v3 = vsel (!%p184_p3), %vm239_vm0, %v238_v1, 0.0  ;;  %v477_v10 = vmov (!%p184_p3), 1966171168   ;;  %vm317_vm1 = vcmask (!%p184_p3), 64512  }
   0x8   : > { %v242_v4 = vadd.f32 (!%p184_p3), %v241_v3, %v240_v2  ;;  %v255_v11 = vunpack.c.l.s4 (!%p184_p3), %v477_v10  ;;  %v258_v14 = vshrl.u32 (!%p184_p3), %v257_v12, 7  ;;  %v243_v19 = vld [vmem:[%s565_s2] sm:$0x1] (!%p184_p3) }
   0x9   : > { %v244_v22 = vld [vmem:[%s566_s3] sm:$0x1] (!%p184_p3) }
   0xa   : > { %v245_v5 = vmul.f32 (!%p184_p3), 0.0078125, %v242_v4  ;;  %v256_v13 = vunpack.c.0.s8 (!%p184_p3), %v255_v11  ;;  %v284_v21 = vsub.s32 (!%p184_p3), 0, %v258_v14 }
   0xc   : > { %v246_v6 = vmul.f32 (!%p184_p3), %v245_v5, %v245_v5  ;;  %v259_v15 = vsub.s32 (!%p184_p3), %v256_v13, %v258_v14 }
   0xe   : > { %v248_v7 = vrot.slane %v246_v6, 7  ;;  %s573_s15 = smov (!%p218_p4, %s467_s15), 1 }
   0xf   : > { %s424_s23 = sshll.u32 %s573_s15, 6 }
  0x10   : > { %v250_v8 = vsub.f32 %v245_v5, %v248_v7  ;;  %s225_s26 = scalar_lea.vmem %s563_s0, %s424_s23  ;;  %s235_s7 = scalar_lea.vmem %s567_s4, %s424_s23 }
  0x11   : > { %v273_v24 = vld [vmem:[%s225_s26] sm:$0xff]  ;;  %v274_v25 = vld [vmem:[%s225_s26 + $0x8] sm:$0xff]  ;;  %v275_v26 = vld [vmem:[%s225_s26 + $0x10] sm:$0xff] }
  0x12   : > { %v251_v9 = vadd.f32 1e-05, %v250_v8  ;;  %v276_v27 = vld [vmem:[%s225_s26 + $0x18] sm:$0xff]  ;;  %v277_v30 = vld [vmem:[%s225_s26 + $0x20] sm:$0xff]  ;;  %v278_v31 = vld [vmem:[%s225_s26 + $0x28] sm:$0xff] }
  0x13   : > { %v279_v32 = vld [vmem:[%s225_s26 + $0x30] sm:$0xff]  ;;  %v280_v33 = vld [vmem:[%s225_s26 + $0x38] sm:$0xff] }
  0x14   : > { %451 = vrsqrt.f32 %v251_v9 }
  0x1e   : > { %v452_v16 = vpop.eup %451 }
  0x1f   : > { %v260_v17 = vrot.slane %v452_v16, %v259_v15 }
  0x21   : > { %v261_v18 = vcombine.high %v260_v17, %v260_v17 }
  0x23   : > { %v268_v20 = vrot.slane %v261_v18, %v259_v15 }
  0x25   : > { %v270_v23 = vmul.f32 %v268_v20, %v243_v19 }
  0x27   : > { %v271_v28 = vmul.f32 %v270_v23, %v245_v5  ;;  %v285_v29 = vrot.slane %v270_v23, %v284_v21 }
  0x29   : > { %v272_v34 = vsub.f32 %v244_v22, %v271_v28  ;;  %v287_v35 = vmul.f32 %v285_v29, %v273_v24  ;;  %v288_v36 = vmul.f32 %v285_v29, %v274_v25  ;;  %v289_v37 = vmul.f32 %v285_v29, %v275_v26 }
  0x2a   : > { %v290_v38 = vmul.f32 %v285_v29, %v276_v27  ;;  %v291_v39 = vmul.f32 %v285_v29, %v277_v30  ;;  %v292_v40 = vmul.f32 %v285_v29, %v278_v31  ;;  %v293_v41 = vmul.f32 %v285_v29, %v279_v32 }
  0x2b   : > { %v299_v42 = vrot.slane %v272_v34, %v284_v21  ;;  %v294_v43 = vmul.f32 %v285_v29, %v280_v33 }
  0x2d   : > { %v301_v44 = vadd.f32 %v299_v42, %v287_v35  ;;  %v302_v45 = vadd.f32 %v299_v42, %v288_v36  ;;  %v303_v46 = vadd.f32 %v299_v42, %v289_v37  ;;  %v304_v47 = vadd.f32 %v299_v42, %v290_v38 }
  0x2e   : > { %v305_v48 = vadd.f32 %v299_v42, %v291_v39  ;;  %v306_v49 = vadd.f32 %v299_v42, %v292_v40  ;;  %v307_v50 = vadd.f32 %v299_v42, %v293_v41  ;;  %v308_v51 = vadd.f32 %v299_v42, %v294_v43 }
  0x2f   : > { %v309_v52 = vmax.f32 %v301_v44, 0.0  ;;  %v310_v53 = vmax.f32 %v302_v45, 0.0  ;;  %v311_v54 = vmax.f32 %v303_v46, 0.0  ;;  %v312_v55 = vmax.f32 %v304_v47, 0.0 }
  0x30   : > { %v313_v56 = vmax.f32 %v305_v48, 0.0  ;;  %v314_v57 = vmax.f32 %v306_v49, 0.0  ;;  %v315_v58 = vmax.f32 %v307_v50, 0.0  ;;  %v316_v59 = vmax.f32 %v308_v51, 0.0 }
  0x31   : > { %318 = vst.msk [vmem:[%s235_s7] sm:$0xff] %vm317_vm1, %v309_v52  ;;  %319 = vst.msk [vmem:[%s235_s7 + $0x8] sm:$0xff] %vm317_vm1, %v310_v53 }
  0x32   : > { %320 = vst.msk [vmem:[%s235_s7 + $0x10] sm:$0xff] %vm317_vm1, %v311_v54  ;;  %321 = vst.msk [vmem:[%s235_s7 + $0x18] sm:$0xff] %vm317_vm1, %v312_v55 }
  0x33   : > { %322 = vst.msk [vmem:[%s235_s7 + $0x20] sm:$0xff] %vm317_vm1, %v313_v56  ;;  %323 = vst.msk [vmem:[%s235_s7 + $0x28] sm:$0xff] %vm317_vm1, %v314_v57 }
  0x34   : > { %324 = vst.msk [vmem:[%s235_s7 + $0x30] sm:$0xff] %vm317_vm1, %v315_v58  ;;  %325 = vst.msk [vmem:[%s235_s7 + $0x38] sm:$0xff] %vm317_vm1, %v316_v59 }
  0x35 PF: > { %s14_s17 = sadd.s32 1, %s475_s17   ;;  %s568_s15 = smov %s471_s16 }
  0x36   : > { %p11_p5 = scmp.ge.s32.totalorder %s14_s17, 4   ;;  %s569_s16 = smov %s571_s18 }
  0x38   :  { %13 = sbr.rel (!%p11_p5) target bundleno = 2 (0x2), region = 66 }

// kernel: _lambda_.3
= control target key start
LH: loop header
LB: loop body
LE: loop exit
PB: predicated region body
PF: predicated region fallthrough
CT: control target
= control target key end

     0   :  { %s1237_s12 = smov 0   ;;  %s1239_s13 = smov 0   ;;  %s1526_s0 = inlined_call_operand.vmem [shape: f32[2,16,8,8], index: 0, kind: input, shape index: {}]   ;;  %s1527_s1 = inlined_call_operand.vmem [shape: f32[36,8], index: 1, kind: input, shape index: {}]   ;;  %s1528_s2 = inlined_call_operand.vmem [shape: f32[2,8,8,8], index: 2, kind: output, shape index: {0}]   ;;  %s1529_s3 = inlined_call_operand.vmem [shape: f32[2,2,8], index: 3, kind: output, shape index: {1}]  }
   0x1   :  { %s1241_s14 = smov 0  }
   0x2 LB: > { %s23_s15 = sadd.s32 1, %s1201_s13  ;;  %p1081_p0 = scmp.ge.s32.totalorder %s1205_s14, 1  ;;  %s1205_s14 = sphi %s1241_s14, %s14_s14   ;;  %s1201_s13 = sphi %s1239_s13, %s1531_s13   ;;  %s1197_s12 = sphi %s1237_s12, %s1530_s12  }
   0x3   : > { %p24_p1 = scmp.ge.s32.totalorder %s23_s15, 2  ;;  %p165_p2 = scmp.lt.s32.totalorder %s1205_s14, 3 }
   0x5   : > { %s1533_s15 = smov (%p24_p1, %s23_s15), 0  ;;  %p166_p3 = pnand %p1081_p0, %p165_p2 }
   0x6   : > { %p203_p4 = scmp.lt.s32.totalorder (!%p166_p3), %s1197_s12, 1  ;;  %vm291_vm0 = vcmask (!%p166_p3), 31744   ;;  %vm293_vm1 = vcmask (!%p166_p3), 25600   ;;  %vm299_vm2 = vcmask (!%p166_p3), 24576   ;;  %v1207_v0 = vmov (!%p166_p3), 0.0   ;;  %s1208_s20 = smov (!%p166_p3), 124  }
   0x7   : > { %169 = sbr.rel (%p166_p3) target bundleno = 622 (0x26e), region = 28  ;;  %292 = vst.msk [vmem:[#allocation2] sm:$0xff] (!%p166_p3), %vm291_vm0, %v1207_v0  ;;  %296 = vst.msk [vmem:[#allocation2 + $0x90] sm:$0xff] (!%p166_p3), %vm291_vm0, %v1207_v0  ;;  %s1209_s21 = smov (!%p166_p3), 4   ;;  %vm380_vm3 = vcmask (!%p166_p3), 64544   ;;  %vm429_vm4 = vcmask (!%p166_p3), 97344  }
   0x8   : > { %294 = vst.msk [vmem:[#allocation2 + $0x8] sm:$0x3] (!%p166_p3), %vm293_vm1, %v1207_v0  ;;  %297 = vst.msk [vmem:[#allocation2 + $0x98] sm:$0x3] (!%p166_p3), %vm293_vm1, %v1207_v0  ;;  %s1210_s22 = smov (!%p166_p3), 24   ;;  %s1211_s23 = smov (!%p166_p3), 8  }
   0x9   : > { %300 = vst.msk [vmem:[#allocation2 + $0x10] sm:$0x1] (!%p166_p3), %vm299_vm2, %v1207_v0  ;;  %301 = vst.msk [vmem:[#allocation2 + $0x20] sm:$0x1] (!%p166_p3), %vm299_vm2, %v1207_v0  ;;  %s1212_s24 = smov (!%p166_p3), 12   ;;  %s1213_s25 = smov (!%p166_p3), 16  }
   0xa   : > { %302 = vst.msk [vmem:[#allocation2 + $0x30] sm:$0x1] (!%p166_p3), %vm299_vm2, %v1207_v0  ;;  %303 = vst.msk [vmem:[#allocation2 + $0x40] sm:$0x1] (!%p166_p3), %vm299_vm2, %v1207_v0  ;;  %s1214_s26 = smov (!%p166_p3), 20   ;;  %v741_v60 = vld [vmem:[%s1527_s1] sm:$0xff] (!%p166_p3) }
   0xb   : > { %304 = vst.msk [vmem:[#allocation2 + $0x50] sm:$0x1] (!%p166_p3), %vm299_vm2, %v1207_v0  ;;  %305 = vst.msk [vmem:[#allocation2 + $0x60] sm:$0x1] (!%p166_p3), %vm299_vm2, %v1207_v0  ;;  %v742_v61 = vld [vmem:[%s1527_s1 + $0x8] sm:$0xff] (!%p166_p3)  ;;  %s1215_s4 = smov (!%p166_p3), 28  }
   0xc   : > { %306 = vst.msk [vmem:[#allocation2 + $0x70] sm:$0x1] (!%p166_p3), %vm299_vm2, %v1207_v0  ;;  %307 = vst.msk [vmem:[#allocation2 + $0x80] sm:$0x1] (!%p166_p3), %vm299_vm2, %v1207_v0  ;;  %v1135_v62 = vpack.c.bf16 (!%p166_p3), %v742_v61, %v741_v60  ;;  %v743_v63 = vld [vmem:[%s1527_s1 + $0x10] sm:$0xff] (!%p166_p3)  ;;  %vm771_vm5 = vcmask (!%p166_p3), 1043456  }
   0xd   : > { %308 = vst.msk [vmem:[#allocation2 + $0x19] sm:$0x1] (!%p166_p3), %vm299_vm2, %v1207_v0  ;;  %309 = vst.msk [vmem:[#allocation2 + $0x29] sm:$0x1] (!%p166_p3), %vm299_vm2, %v1207_v0  ;;  %s1216_s11 = smov (!%p166_p3), 32   ;;  %vm478_vm6 = vcmask (!%p166_p3), 130144  }
   0xe   : > { %310 = vst.msk [vmem:[#allocation2 + $0x39] sm:$0x1] %vm299_vm2, %v1207_v0  ;;  %311 = vst.msk [vmem:[#allocation2 + $0x49] sm:$0x1] %vm299_vm2, %v1207_v0  ;;  %s1535_s12 = smov (!%p203_p4, %s1197_s12), 1  ;;  %v593_v26 = vld [vmem:[#allocation2 + $0x90] sm:$0xff]  ;;  %1136 = vmatprep.subr.bf16.mxu0 %v1135_v62  ;;  %1143 = vmatprep.subr.bf16.mxu1 %v1135_v62 }
   0xf   : > { %312 = vst.msk [vmem:[#allocation2 + $0x59] sm:$0x1] %vm299_vm2, %v1207_v0  ;;  %313 = vst.msk [vmem:[#allocation2 + $0x69] sm:$0x1] %vm299_vm2, %v1207_v0  ;;  %s1098_s16 = sshll.u32 %s1535_s12, 7  ;;  %v340_v25 = vld [vmem:[#allocation2 + $0x1] sm:$0xff]  ;;  %1138 = vmatpush3.bf16.msra.mxu0 %v1135_v62  ;;  %1146 = vmatpush3.bf16.msra.mxu1 %v1135_v62 }
  0x10   : > { %314 = vst.msk [vmem:[#allocation2 + $0x79] sm:$0x1] %vm299_vm2, %v1207_v0  ;;  %315 = vst.msk [vmem:[#allocation2 + $0x89] sm:$0x1] %vm299_vm2, %v1207_v0  ;;  %s207_s19 = scalar_lea.vmem %s1526_s0, %s1098_s16  ;;  %v389_v27 = vld [vmem:[#allocation2 + $0x2] sm:$0xff]  ;;  %v744_v0 = vld [vmem:[%s1527_s1 + $0x18] sm:$0xff] }
  0x11   : > { %v227_v1 = vld [vmem:[%s207_s19] sm:$0xff]  ;;  %v228_v2 = vld [vmem:[%s207_s19 + $0x8] sm:$0xff]  ;;  %v229_v3 = vld [vmem:[%s207_s19 + $0x10] sm:$0xff]  ;;  %vm527_vm7 = vcmask 162944   ;;  %vm576_vm8 = vcmask 195744   ;;  %vm626_vm9 = vcmask 228544  }
  0x12   : > { %v243_v4 = vmax.f32 %v227_v1, %v228_v2  ;;  %v230_v5 = vld [vmem:[%s207_s19 + $0x18] sm:$0xff]  ;;  %v231_v6 = vld [vmem:[%s207_s19 + $0x20] sm:$0xff]  ;;  %v232_v7 = vld [vmem:[%s207_s19 + $0x28] sm:$0xff]  ;;  %v1139_v2 = vpack.c.bf16 %v744_v0, %v743_v63  ;;  %vm675_vm10 = vcmask 261344   ;;  %vm724_vm11 = vcmask 294144   ;;  %s1099_s16 = sshll.u32 %s1535_s12, 6 }
  0x13   : > { %v245_v8 = vmax.f32 %v231_v6, %v232_v7  ;;  %v233_v9 = vld [vmem:[%s207_s19 + $0x30] sm:$0xff]  ;;  %v234_v10 = vld [vmem:[%s207_s19 + $0x38] sm:$0xff]  ;;  %v244_v11 = vmax.f32 %v229_v3, %v230_v5  ;;  %v235_v13 = vld [vmem:[%s207_s19 + $0x40] sm:$0xff]  ;;  %vm746_vm12 = vcmask 293888   ;;  %vm880_vm13 = vcmask 64512  }
  0x14   : > { %259 = vrot.lane.b32.xlu0 %v243_v4, %s1208_s20  ;;  %v246_v12 = vmax.f32 %v233_v9, %v234_v10  ;;  %v236_v14 = vld [vmem:[%s207_s19 + $0x48] sm:$0xff]  ;;  %v237_v15 = vld [vmem:[%s207_s19 + $0x50] sm:$0xff]  ;;  %v238_v16 = vld [vmem:[%s207_s19 + $0x58] sm:$0xff]  ;;  %1140 = vmatprep.subr.bf16.mxu0 %v1139_v2  ;;  %vm939_vm14 = vcmask 57344  }
  0x15   : > { %263 = vrot.lane.b32.xlu1 %v245_v8, %s1208_s20  ;;  %v247_v17 = vmax.f32 %v235_v13, %v236_v14  ;;  %v248_v18 = vmax.f32 %v237_v15, %v238_v16  ;;  %v239_v19 = vld [vmem:[%s207_s19 + $0x60] sm:$0xff]  ;;  %v240_v20 = vld [vmem:[%s207_s19 + $0x68] sm:$0xff]  ;;  %v241_v21 = vld [vmem:[%s207_s19 + $0x70] sm:$0xff]  ;;  %1144 = vmatprep.subr.bf16.mxu1 %v1139_v2 }
  0x16   : > { %v242_v22 = vld [vmem:[%s207_s19 + $0x78] sm:$0xff]  ;;  %v249_v23 = vmax.f32 %v239_v19, %v240_v20  ;;  %v324_v28 = vld [vmem:[#allocation2] sm:$0xff]  ;;  %1142 = vmatpush3.bf16.msra.mxu0 %v1139_v2  ;;  %1147 = vmatpush3.bf16.msra.mxu1 %v1139_v2  ;;  %s1479_s19 = scalar_lea.vmem %s1528_s2, %s1099_s16 }
  0x17   : > { %v250_v24 = vmax.f32 %v241_v21, %v242_v22  ;;  %332 = vst.msk [vmem:[#allocation3] sm:$0xff] %vm291_vm0, %v324_v28  ;;  %v745_v3 = vld [vmem:[%s1527_s1 + $0x20] sm:$0xf]  ;;  %v642_v15 = vld [vmem:[#allocation2 + $0x91] sm:$0xff] }
  0x18   : > { %261 = vrot.lane.b32.xlu0 %v244_v11, %s1208_s20  ;;  %1121 = vmatprep.subr.msk.mxu0 %vm771_vm5, %v745_v3 }
  0x19   : > { %265 = vrot.lane.b32.xlu1 %v246_v12, %s1208_s20  ;;  %1145 = vmatprep.subr.msk.mxu1 %vm771_vm5, %v745_v3 }
  0x1a   : > { %1122 = vmatpush3.msk.msra.mxu0 %vm771_vm5, %v745_v3  ;;  %1148 = vmatpush3.msk.msra.mxu1 %vm771_vm5, %v745_v3 }
  0x1c   : > { %267 = vrot.lane.b32.xlu0 %v247_v17, %s1208_s20 }
  0x1d   : > { %269 = vrot.lane.b32.xlu1 %v248_v18, %s1208_s20 }
  0x20   : > { %271 = vrot.lane.b32.xlu0 %v249_v23, %s1208_s20 }
  0x21   : > { %273 = vrot.lane.b32.xlu1 %v250_v24, %s1208_s20  ;;  %s1086_s20 = sshll.u32 %s1535_s12, 1 }
  0x24   : > { %356 = vrot.lane.b32.xlu0 %v340_v25, %s1209_s21 }
  0x25   : > { %616 = vrot.lane.b32.xlu1 %v593_v26, %s1210_s22 }
  0x28   : > { %405 = vrot.lane.b32.xlu0 %v389_v27, %s1211_s23 }
  0x86   : > { %v260_v29 = vpop.permute.xlu0 %259 }
  0x87   : > { %v283_v30 = vmax.f32 %v243_v4, %v260_v29  ;;  %v264_v31 = vpop.permute.xlu1 %263 }
  0x88   : > { %v285_v32 = vmax.f32 %v245_v8, %v264_v31 }
  0x89   : > { %316 = vst.msk [vmem:[#allocation2 + $0x11] sm:$0xff] %vm291_vm0, %v283_v30 }
  0x8a   : > { %v262_v33 = vpop.permute.xlu0 %261  ;;  %318 = vst.msk [vmem:[#allocation2 + $0x31] sm:$0xff] %vm291_vm0, %v285_v32 }
  0x8b   : > { %v284_v34 = vmax.f32 %v244_v11, %v262_v33  ;;  %v266_v35 = vpop.permute.xlu1 %265 }
  0x8c   : > { %v286_v36 = vmax.f32 %v246_v12, %v266_v35 }
  0x8d   : > { %317 = vst.msk [vmem:[#allocation2 + $0x21] sm:$0xff] %vm291_vm0, %v284_v34 }
  0x8e   : > { %319 = vst.msk [vmem:[#allocation2 + $0x41] sm:$0xff] %vm291_vm0, %v286_v36  ;;  %v268_v37 = vpop.permute.xlu0 %267 }
  0x8f   : > { %v287_v38 = vmax.f32 %v247_v17, %v268_v37  ;;  %v270_v39 = vpop.permute.xlu1 %269 }
  0x90   : > { %v438_v40 = vld [vmem:[#allocation2 + $0x10] sm:$0xff]  ;;  %v288_v42 = vmax.f32 %v248_v18, %v270_v39 }
  0x91   : > { %v341_v41 = vld [vmem:[#allocation2 + $0x11] sm:$0xff]  ;;  %454 = vrot.lane.b32.xlu0 %v438_v40, %s1212_s24  ;;  %320 = vst.msk [vmem:[#allocation2 + $0x51] sm:$0xff] %vm291_vm0, %v287_v38  ;;  %333 = vst.msk [vmem:[#allocation3 + $0x8] sm:$0xff] %vm291_vm0, %v438_v40 }
  0x92   : > { %358 = vrot.lane.b32.xlu1 %v341_v41, %s1209_s21  ;;  %v587_v43 = vld [vmem:[#allocation2 + $0x30] sm:$0xff]  ;;  %321 = vst.msk [vmem:[#allocation2 + $0x61] sm:$0xff] %vm291_vm0, %v288_v42  ;;  %v272_v44 = vpop.permute.xlu0 %271 }
  0x93   : > { %335 = vst.msk [vmem:[#allocation3 + $0x18] sm:$0xff] %vm291_vm0, %v587_v43  ;;  %v289_v45 = vmax.f32 %v249_v23, %v272_v44  ;;  %v274_v46 = vpop.permute.xlu1 %273  ;;  %v390_v47 = vld [vmem:[#allocation2 + $0x12] sm:$0xff] }
  0x94   : > { %v439_v48 = vld [vmem:[#allocation2 + $0x20] sm:$0xff]  ;;  %v290_v49 = vmax.f32 %v250_v24, %v274_v46  ;;  %v343_v55 = vld [vmem:[#allocation2 + $0x31] sm:$0xff] }
  0x95   : > { %503 = vrot.lane.b32.xlu0 %v341_v41, %s1213_s25  ;;  %v1301_v50 = vld [vmem:[#allocation2 + $0x40] sm:$0xff]  ;;  %322 = vst.msk [vmem:[#allocation2 + $0x71] sm:$0xff] %vm291_vm0, %v289_v45  ;;  %334 = vst.msk [vmem:[#allocation3 + $0x10] sm:$0xff] %vm291_vm0, %v439_v48  ;;  %v392_v59 = vld [vmem:[#allocation2 + $0x32] sm:$0xff] }
  0x96   : > { %407 = vrot.lane.b32.xlu1 %v390_v47, %s1211_s23  ;;  %v488_v51 = vld [vmem:[#allocation2 + $0x21] sm:$0xff]  ;;  %323 = vst.msk [vmem:[#allocation2 + $0x81] sm:$0xff] %vm291_vm0, %v290_v49  ;;  %v357_v52 = vpop.permute.xlu0 %356  ;;  %336 = vst.msk [vmem:[#allocation3 + $0x20] sm:$0xff] %vm291_vm0, %v1301_v50  ;;  %v691_v18 = vld [vmem:[#allocation2 + $0x92] sm:$0xff] }
  0x97   : > { %381 = vst.msk [vmem:[#allocation3] sm:$0xff] %vm380_vm3, %v357_v52  ;;  %v537_v58 = vld [vmem:[#allocation2 + $0x22] sm:$0xff]  ;;  %v1397_v13 = vpop.permute.xlu1 %616 }
  0x98   : > { %v1309_v53 = vld [vmem:[#allocation2 + $0x50] sm:$0xff]  ;;  %v344_v1 = vld [vmem:[#allocation2 + $0x41] sm:$0xff] }
  0x99   : > { %505 = vrot.lane.b32.xlu0 %v488_v51, %s1213_s25  ;;  %v1313_v54 = vld [vmem:[#allocation2 + $0x60] sm:$0xff]  ;;  %337 = vst.msk [vmem:[#allocation3 + $0x28] sm:$0xff] %vm291_vm0, %v1309_v53  ;;  %v345_v4 = vld [vmem:[#allocation2 + $0x51] sm:$0xff] }
  0x9a   : > { %456 = vrot.lane.b32.xlu1 %v439_v48, %s1212_s24  ;;  %v406_v56 = vpop.permute.xlu0 %405  ;;  %338 = vst.msk [vmem:[#allocation3 + $0x30] sm:$0xff] %vm291_vm0, %v1313_v54  ;;  %v539_v5 = vld [vmem:[#allocation2 + $0x42] sm:$0xff]  ;;  %v394_v6 = vld [vmem:[#allocation2 + $0x52] sm:$0xff] }
  0x9b   : > { %430 = vst.msk [vmem:[#allocation3] sm:$0xff] %vm429_vm4, %v406_v56  ;;  %v346_v7 = vld [vmem:[#allocation2 + $0x61] sm:$0xff] }
  0x9c   : > { %v1320_v57 = vld [vmem:[#allocation2 + $0x70] sm:$0xff]  ;;  %v541_v9 = vld [vmem:[#allocation2 + $0x62] sm:$0xff] }
  0x9d   : > { %362 = vrot.lane.b32.xlu0 %v343_v55, %s1209_s21  ;;  %339 = vst.msk [vmem:[#allocation3 + $0x38] sm:$0xff] %vm291_vm0, %v1320_v57  ;;  %v347_v8 = vld [vmem:[#allocation2 + $0x71] sm:$0xff]  ;;  %v445_v11 = vld [vmem:[#allocation2 + $0x80] sm:$0xff] }
  0x9e   : > { %360 = vrot.lane.b32.xlu1 %v488_v51, %s1209_s21  ;;  %v396_v10 = vld [vmem:[#allocation2 + $0x72] sm:$0xff]  ;;  %v494_v12 = vld [vmem:[#allocation2 + $0x81] sm:$0xff] }
  0x9f   : > { %v543_v14 = vld [vmem:[#allocation2 + $0x82] sm:$0xff] }
  0xa1   : > { %554 = vrot.lane.b32.xlu0 %v537_v58, %s1214_s26 }
  0xa2   : > { %552 = vrot.lane.b32.xlu1 %v390_v47, %s1214_s26 }
  0xa5   : > { %411 = vrot.lane.b32.xlu0 %v392_v59, %s1211_s23 }
  0xa6   : > { %409 = vrot.lane.b32.xlu1 %v537_v58, %s1211_s23 }
  0xa9   : > { %604 = vrot.lane.b32.xlu0 %v587_v43, %s1210_s22 }
  0xaa   : > { %602 = vrot.lane.b32.xlu1 %v439_v48, %s1210_s22 }
  0xad   : > { %460 = vrot.lane.b32.xlu0 %v1301_v50, %s1212_s24 }
  0xae   : > { %458 = vrot.lane.b32.xlu1 %v587_v43, %s1212_s24 }
  0xb1   : > { %653 = vrot.lane.b32.xlu0 %v343_v55, %s1215_s4 }
  0xb2   : > { %651 = vrot.lane.b32.xlu1 %v488_v51, %s1215_s4 }
  0xb5   : > { %364 = vrot.lane.b32.xlu0 %v344_v1, %s1209_s21 }
  0xb6   : > { %507 = vrot.lane.b32.xlu1 %v343_v55, %s1213_s25 }
  0xb9   : > { %556 = vrot.lane.b32.xlu0 %v392_v59, %s1214_s26 }
  0xba   : > { %700 = vrot.lane.b32.xlu1 %v537_v58, %s1216_s11 }
  0xbd   : > { %366 = vrot.lane.b32.xlu0 %v345_v4, %s1209_s21 }
  0xbe   : > { %509 = vrot.lane.b32.xlu1 %v344_v1, %s1213_s25 }
  0xc1   : > { %558 = vrot.lane.b32.xlu0 %v539_v5, %s1214_s26 }
  0xc2   : > { %702 = vrot.lane.b32.xlu1 %v392_v59, %s1216_s11 }
  0xc5   : > { %415 = vrot.lane.b32.xlu0 %v394_v6, %s1211_s23 }
  0xc6   : > { %413 = vrot.lane.b32.xlu1 %v539_v5, %s1211_s23 }
  0xc9   : > { %608 = vrot.lane.b32.xlu0 %v1309_v53, %s1210_s22 }
  0xca   : > { %606 = vrot.lane.b32.xlu1 %v1301_v50, %s1210_s22 }
  0xcd   : > { %464 = vrot.lane.b32.xlu0 %v1313_v54, %s1212_s24 }
  0xce   : > { %462 = vrot.lane.b32.xlu1 %v1309_v53, %s1212_s24 }
  0xd1   : > { %657 = vrot.lane.b32.xlu0 %v345_v4, %s1215_s4 }
  0xd2   : > { %655 = vrot.lane.b32.xlu1 %v344_v1, %s1215_s4 }
  0xd5   : > { %368 = vrot.lane.b32.xlu0 %v346_v7, %s1209_s21 }
  0xd6   : > { %511 = vrot.lane.b32.xlu1 %v345_v4, %s1213_s25 }
  0xd9   : > { %560 = vrot.lane.b32.xlu0 %v394_v6, %s1214_s26 }
  0xda   : > { %704 = vrot.lane.b32.xlu1 %v539_v5, %s1216_s11 }
  0xdd   : > { %370 = vrot.lane.b32.xlu0 %v347_v8, %s1209_s21 }
  0xde   : > { %513 = vrot.lane.b32.xlu1 %v346_v7, %s1213_s25 }
  0xe1   : > { %562 = vrot.lane.b32.xlu0 %v541_v9, %s1214_s26 }
  0xe2   : > { %706 = vrot.lane.b32.xlu1 %v394_v6, %s1216_s11 }
  0xe5   : > { %419 = vrot.lane.b32.xlu0 %v396_v10, %s1211_s23 }
  0xe6   : > { %417 = vrot.lane.b32.xlu1 %v541_v9, %s1211_s23  ;;  %s226_s23 = scalar_lea.vmem %s1529_s3, %s1086_s20 }
  0xe9   : > { %612 = vrot.lane.b32.xlu0 %v1320_v57, %s1210_s22 }
  0xea   : > { %610 = vrot.lane.b32.xlu1 %v1313_v54, %s1210_s22 }
  0xed   : > { %468 = vrot.lane.b32.xlu0 %v445_v11, %s1212_s24 }
  0xee   : > { %466 = vrot.lane.b32.xlu1 %v1320_v57, %s1212_s24 }
  0xf1   : > { %661 = vrot.lane.b32.xlu0 %v347_v8, %s1215_s4 }
  0xf2   : > { %659 = vrot.lane.b32.xlu1 %v346_v7, %s1215_s4 }
  0xf5   : > { %517 = vrot.lane.b32.xlu0 %v494_v12, %s1213_s25 }
  0xf6   : > { %515 = vrot.lane.b32.xlu1 %v347_v8, %s1213_s25 }
  0xf9   : > { %710 = vrot.lane.b32.xlu0 %v396_v10, %s1216_s11 }
  0xfa   : > { %708 = vrot.lane.b32.xlu1 %v541_v9, %s1216_s11 }
  0xfd   : > { %614 = vrot.lane.b32.xlu0 %v445_v11, %s1210_s22 }
  0xfe   : > { %564 = vrot.lane.b32.xlu1 %v396_v10, %s1214_s26 }
 0x101   : > { %663 = vrot.lane.b32.xlu0 %v494_v12, %s1215_s4 }
 0x102   : > { %566 = vrot.lane.b32.xlu1 %v543_v14, %s1214_s26 }
 0x103   : > { %v455_v17 = vpop.permute.xlu0 %454 }
 0x104   : > { %v359_v16 = vpop.permute.xlu1 %358  ;;  %479 = vst.msk [vmem:[#allocation3] sm:$0xff] %vm478_vm6, %v455_v17 }
 0x105   : > { %382 = vst.msk [vmem:[#allocation3 + $0x8] sm:$0xff] %vm380_vm3, %v359_v16  ;;  %712 = vrot.lane.b32.xlu0 %v543_v14, %s1216_s11 }
 0x106   : > { %665 = vrot.lane.b32.xlu1 %v642_v15, %s1215_s4 }
 0x107   : > { %v504_v20 = vpop.permute.xlu0 %503 }
 0x108   : > { %v408_v19 = vpop.permute.xlu1 %407  ;;  %528 = vst.msk [vmem:[#allocation3] sm:$0xff] %vm527_vm7, %v504_v20 }
 0x109   : > { %431 = vst.msk [vmem:[#allocation3 + $0x8] sm:$0xff] %vm429_vm4, %v408_v19 }
 0x10a   : > { %714 = vrot.lane.b32.xlu1 %v691_v18, %s1216_s11 }
 0x10b   : > { %v506_v22 = vpop.permute.xlu0 %505 }
 0x10c   : > { %v457_v21 = vpop.permute.xlu1 %456 }
 0x10d   : > { %480 = vst.msk [vmem:[#allocation3 + $0x8] sm:$0xff] %vm478_vm6, %v457_v21 }
 0x10e   : > { %529 = vst.msk [vmem:[#allocation3 + $0x8] sm:$0xff] %vm527_vm7, %v506_v22 }
 0x10f   : > { %v363_v24 = vpop.permute.xlu0 %362 }
 0x110   : > { %v361_v23 = vpop.permute.xlu1 %360  ;;  %384 = vst.msk [vmem:[#allocation3 + $0x18] sm:$0xff] %vm380_vm3, %v363_v24 }
 0x111   : > { %383 = vst.msk [vmem:[#allocation3 + $0x10] sm:$0xff] %vm380_vm3, %v361_v23 }
 0x113   : > { %v555_v26 = vpop.permute.xlu0 %554 }
 0x114   : > { %v553_v25 = vpop.permute.xlu1 %552  ;;  %578 = vst.msk [vmem:[#allocation3 + $0x8] sm:$0xff] %vm576_vm8, %v555_v26 }
 0x115   : > { %577 = vst.msk [vmem:[#allocation3] sm:$0xff] %vm576_vm8, %v553_v25 }
 0x117   : > { %v412_v28 = vpop.permute.xlu0 %411 }
 0x118   : > { %v410_v27 = vpop.permute.xlu1 %409  ;;  %433 = vst.msk [vmem:[#allocation3 + $0x18] sm:$0xff] %vm429_vm4, %v412_v28 }
 0x119   : > { %432 = vst.msk [vmem:[#allocation3 + $0x10] sm:$0xff] %vm429_vm4, %v410_v27 }
 0x11b   : > { %v605_v30 = vpop.permute.xlu0 %604 }
 0x11c   : > { %v603_v29 = vpop.permute.xlu1 %602  ;;  %628 = vst.msk [vmem:[#allocation3 + $0x8] sm:$0xff] %vm626_vm9, %v605_v30 }
 0x11d   : > { %627 = vst.msk [vmem:[#allocation3] sm:$0xff] %vm626_vm9, %v603_v29 }
 0x11f   : > { %v461_v32 = vpop.permute.xlu0 %460 }
 0x120   : > { %v459_v31 = vpop.permute.xlu1 %458  ;;  %482 = vst.msk [vmem:[#allocation3 + $0x18] sm:$0xff] %vm478_vm6, %v461_v32 }
 0x121   : > { %481 = vst.msk [vmem:[#allocation3 + $0x10] sm:$0xff] %vm478_vm6, %v459_v31 }
 0x123   : > { %v654_v34 = vpop.permute.xlu0 %653 }
 0x124   : > { %v652_v33 = vpop.permute.xlu1 %651  ;;  %677 = vst.msk [vmem:[#allocation3 + $0x8] sm:$0xff] %vm675_vm10, %v654_v34 }
 0x125   : > { %676 = vst.msk [vmem:[#allocation3] sm:$0xff] %vm675_vm10, %v652_v33 }
 0x127   : > { %v365_v36 = vpop.permute.xlu0 %364 }
 0x128   : > { %v508_v35 = vpop.permute.xlu1 %507  ;;  %385 = vst.msk [vmem:[#allocation3 + $0x20] sm:$0xff] %vm380_vm3, %v365_v36 }
 0x129   : > { %530 = vst.msk [vmem:[#allocation3 + $0x10] sm:$0xff] %vm527_vm7, %v508_v35 }
 0x12b   : > { %v557_v38 = vpop.permute.xlu0 %556 }
 0x12c   : > { %v701_v37 = vpop.permute.xlu1 %700  ;;  %579 = vst.msk [vmem:[#allocation3 + $0x10] sm:$0xff] %vm576_vm8, %v557_v38 }
 0x12d   : > { %725 = vst.msk [vmem:[#allocation3] sm:$0xff] %vm724_vm11, %v701_v37 }
 0x12f   : > { %v367_v40 = vpop.permute.xlu0 %366 }
 0x130   : > { %v510_v39 = vpop.permute.xlu1 %509  ;;  %386 = vst.msk [vmem:[#allocation3 + $0x28] sm:$0xff] %vm380_vm3, %v367_v40 }
 0x131   : > { %531 = vst.msk [vmem:[#allocation3 + $0x18] sm:$0xff] %vm527_vm7, %v510_v39 }
 0x133   : > { %v559_v42 = vpop.permute.xlu0 %558 }
 0x134   : > { %v703_v41 = vpop.permute.xlu1 %702  ;;  %v733_v43 = vld [vmem:[#allocation3] sm:$0xff]  ;;  %580 = vst.msk [vmem:[#allocation3 + $0x18] sm:$0xff] %vm576_vm8, %v559_v42 }
 0x135   : > { %726 = vst.msk [vmem:[#allocation3 + $0x8] sm:$0xff] %vm724_vm11, %v703_v41  ;;  %1123 = vmatprep.mubr.msk.f32.mxu0 %vm746_vm12, %v733_v43 }
 0x137   : > { %v416_v45 = vpop.permute.xlu0 %415 }
 0x138   : > { %v414_v44 = vpop.permute.xlu1 %413  ;;  %435 = vst.msk [vmem:[#allocation3 + $0x28] sm:$0xff] %vm429_vm4, %v416_v45 }
 0x139   : > { %434 = vst.msk [vmem:[#allocation3 + $0x20] sm:$0xff] %vm429_vm4, %v414_v44 }
 0x13b   : > { %v609_v47 = vpop.permute.xlu0 %608 }
 0x13c   : > { %v607_v46 = vpop.permute.xlu1 %606  ;;  %v734_v48 = vld [vmem:[#allocation3 + $0x8] sm:$0xff]  ;;  %630 = vst.msk [vmem:[#allocation3 + $0x18] sm:$0xff] %vm626_vm9, %v609_v47 }
 0x13d   : > { %629 = vst.msk [vmem:[#allocation3 + $0x10] sm:$0xff] %vm626_vm9, %v607_v46  ;;  %1124 = vmatmul.mubr.msk.f32.vlgmr.msra.gmra.mrb[0].mxu0 %vm746_vm12, %v734_v48 }
 0x13f   : > { %v465_v50 = vpop.permute.xlu0 %464 }
 0x140   : > { %v463_v49 = vpop.permute.xlu1 %462  ;;  %484 = vst.msk [vmem:[#allocation3 + $0x28] sm:$0xff] %vm478_vm6, %v465_v50 }
 0x141   : > { %483 = vst.msk [vmem:[#allocation3 + $0x20] sm:$0xff] %vm478_vm6, %v463_v49 }
 0x143   : > { %v658_v52 = vpop.permute.xlu0 %657 }
 0x144   : > { %v656_v51 = vpop.permute.xlu1 %655  ;;  %679 = vst.msk [vmem:[#allocation3 + $0x18] sm:$0xff] %vm675_vm10, %v658_v52 }
 0x145   : > { %678 = vst.msk [vmem:[#allocation3 + $0x10] sm:$0xff] %vm675_vm10, %v656_v51 }
 0x147   : > { %v369_v54 = vpop.permute.xlu0 %368 }
 0x148   : > { %v512_v53 = vpop.permute.xlu1 %511  ;;  %387 = vst.msk [vmem:[#allocation3 + $0x30] sm:$0xff] %vm380_vm3, %v369_v54 }
 0x149   : > { %532 = vst.msk [vmem:[#allocation3 + $0x20] sm:$0xff] %vm527_vm7, %v512_v53 }
 0x14b   : > { %v561_v56 = vpop.permute.xlu0 %560 }
 0x14c   : > { %v705_v55 = vpop.permute.xlu1 %704  ;;  %581 = vst.msk [vmem:[#allocation3 + $0x20] sm:$0xff] %vm576_vm8, %v561_v56 }
 0x14d   : > { %727 = vst.msk [vmem:[#allocation3 + $0x10] sm:$0xff] %vm724_vm11, %v705_v55 }
 0x14f   : > { %v371_v58 = vpop.permute.xlu0 %370 }
 0x150   : > { %v514_v57 = vpop.permute.xlu1 %513  ;;  %388 = vst.msk [vmem:[#allocation3 + $0x38] sm:$0xff] %vm380_vm3, %v371_v58 }
 0x151   : > { %533 = vst.msk [vmem:[#allocation3 + $0x28] sm:$0xff] %vm527_vm7, %v514_v57 }
 0x153   : > { %v563_v60 = vpop.permute.xlu0 %562 }
 0x154   : > { %v707_v59 = vpop.permute.xlu1 %706  ;;  %v735_v61 = vld [vmem:[#allocation3 + $0x10] sm:$0xff]  ;;  %582 = vst.msk [vmem:[#allocation3 + $0x28] sm:$0xff] %vm576_vm8, %v563_v60 }
 0x155   : > { %728 = vst.msk [vmem:[#allocation3 + $0x18] sm:$0xff] %vm724_vm11, %v707_v59  ;;  %1126 = vmatprep.mubr.msk.f32.mxu0 %vm746_vm12, %v735_v61 }
 0x157   : > { %v420_v63 = vpop.permute.xlu0 %419 }
 0x158   : > { %v418_v62 = vpop.permute.xlu1 %417  ;;  %437 = vst.msk [vmem:[#allocation3 + $0x38] sm:$0xff] %vm429_vm4, %v420_v63 }
 0x159   : > { %436 = vst.msk [vmem:[#allocation3 + $0x30] sm:$0xff] %vm429_vm4, %v418_v62 }
 0x15b   : > { %v613_v1 = vpop.permute.xlu0 %612 }
 0x15c   : > { %v611_v0 = vpop.permute.xlu1 %610  ;;  %v736_v2 = vld [vmem:[#allocation3 + $0x18] sm:$0xff]  ;;  %632 = vst.msk [vmem:[#allocation3 + $0x28] sm:$0xff] %vm626_vm9, %v613_v1 }
 0x15d   : > { %631 = vst.msk [vmem:[#allocation3 + $0x20] sm:$0xff] %vm626_vm9, %v611_v0  ;;  %1127 = vmatmul.mubr.msk.f32.gmra.mrb[2].mxu0 %vm746_vm12, %v736_v2 }
 0x15f   : > { %v469_v4 = vpop.permute.xlu0 %468 }
 0x160   : > { %v467_v3 = vpop.permute.xlu1 %466  ;;  %486 = vst.msk [vmem:[#allocation3 + $0x38] sm:$0xff] %vm478_vm6, %v469_v4 }
 0x161   : > { %485 = vst.msk [vmem:[#allocation3 + $0x30] sm:$0xff] %vm478_vm6, %v467_v3 }
 0x163   : > { %v662_v6 = vpop.permute.xlu0 %661 }
 0x164   : > { %v660_v5 = vpop.permute.xlu1 %659  ;;  %681 = vst.msk [vmem:[#allocation3 + $0x28] sm:$0xff] %vm675_vm10, %v662_v6 }
 0x165   : > { %680 = vst.msk [vmem:[#allocation3 + $0x20] sm:$0xff] %vm675_vm10, %v660_v5 }
 0x167   : > { %v518_v8 = vpop.permute.xlu0 %517 }
 0x168   : > { %v516_v7 = vpop.permute.xlu1 %515  ;;  %535 = vst.msk [vmem:[#allocation3 + $0x38] sm:$0xff] %vm527_vm7, %v518_v8 }
 0x169   : > { %534 = vst.msk [vmem:[#allocation3 + $0x30] sm:$0xff] %vm527_vm7, %v516_v7 }
 0x16b   : > { %v711_v10 = vpop.permute.xlu0 %710 }
 0x16c   : > { %v709_v9 = vpop.permute.xlu1 %708  ;;  %730 = vst.msk [vmem:[#allocation3 + $0x28] sm:$0xff] %vm724_vm11, %v711_v10 }
 0x16d   : > { %729 = vst.msk [vmem:[#allocation3 + $0x20] sm:$0xff] %vm724_vm11, %v709_v9 }
 0x16f   : > { %v615_v12 = vpop.permute.xlu0 %614 }
 0x170   : > { %v565_v11 = vpop.permute.xlu1 %564 }
 0x171   : > { %583 = vst.msk [vmem:[#allocation3 + $0x30] sm:$0xff] %vm576_vm8, %v565_v11 }
 0x172   : > { %633 = vst.msk [vmem:[#allocation3 + $0x30] sm:$0xff] %vm626_vm9, %v615_v12 }
 0x173   : > { %v664_v15 = vpop.permute.xlu0 %663  ;;  %v738_v17 = vld [vmem:[#allocation3 + $0x28] sm:$0xff] }
 0x174   : > { %v567_v14 = vpop.permute.xlu1 %566  ;;  %v737_v16 = vld [vmem:[#allocation3 + $0x20] sm:$0xff]  ;;  %682 = vst.msk [vmem:[#allocation3 + $0x30] sm:$0xff] %vm675_vm10, %v664_v15 }
 0x175   : > { %584 = vst.msk [vmem:[#allocation3 + $0x38] sm:$0xff] %vm576_vm8, %v567_v14  ;;  %1129 = vmatprep.mubr.msk.f32.mxu1 %vm746_vm12, %v737_v16 }
 0x176   : > { %634 = vst.msk [vmem:[#allocation3 + $0x38] sm:$0xff] %vm626_vm9, %v1397_v13  ;;  %1130 = vmatmul.mubr.msk.f32.vlgmr.msra.gmra.mrb[0].mxu1 %vm746_vm12, %v738_v17 }
 0x177   : > { %v713_v19 = vpop.permute.xlu0 %712 }
 0x178   : > { %v666_v18 = vpop.permute.xlu1 %665  ;;  %731 = vst.msk [vmem:[#allocation3 + $0x30] sm:$0xff] %vm724_vm11, %v713_v19 }
 0x179   : > { %683 = vst.msk [vmem:[#allocation3 + $0x38] sm:$0xff] %vm675_vm10, %v666_v18 }
 0x17c   : > { %v715_v20 = vpop.permute.xlu1 %714 }
 0x17d   : > { %732 = vst.msk [vmem:[#allocation3 + $0x38] sm:$0xff] %vm724_vm11, %v715_v20 }
 0x17f   : > { %v739_v21 = vld [vmem:[#allocation3 + $0x30] sm:$0xff] }
 0x180   : > { %1132 = vmatprep.mubr.msk.f32.mxu1 %vm746_vm12, %v739_v21 }
 0x184   : > { %v740_v22 = vld [vmem:[#allocation3 + $0x38] sm:$0xff] }
 0x185   : > { %1133 = vmatmul.mubr.msk.f32.gmra.mrb[2].mxu1 %vm746_vm12, %v740_v22 }
 0x210   : > { %v1125_v13 = vpop.f32.mrb[0].mxu0 }
 0x211   : > { %882 = vst.msk [vmem:[%s1479_s19 + $0x8] sm:$0xff] %vm880_vm13, %v1125_v13  ;;  %v890_v23 = vsel %vm880_vm13, %v1125_v13, 0.0  ;;  %v911_v24 = vmul.f32 %v1125_v13, %v1125_v13  ;;  %v841_v25 = vpop.f32.mrb[1].mxu0 }
 0x212   : > { %881 = vst.msk [vmem:[%s1479_s19] sm:$0xff] %vm880_vm13, %v841_v25  ;;  %v889_v26 = vsel %vm880_vm13, %v841_v25, 0.0  ;;  %v910_v27 = vmul.f32 %v841_v25, %v841_v25 }
 0x213   : > { %v919_v28 = vsel %vm880_vm13, %v911_v24, 0.0  ;;  %v891_v29 = vadd.f32 %v890_v23, %v889_v26 }
 0x214   : > { %v918_v30 = vsel %vm880_vm13, %v910_v27, 0.0 }
 0x215   : > { %v920_v31 = vadd.f32 %v919_v28, %v918_v30 }
 0x230   : > { %v1128_v32 = vpop.f32.mrb[2].mxu0 }
 0x231   : > { %884 = vst.msk [vmem:[%s1479_s19 + $0x18] sm:$0xff] %vm880_vm13, %v1128_v32  ;;  %v851_v33 = vpop.f32.mrb[3].mxu0  ;;  %v913_v34 = vmul.f32 %v1128_v32, %v1128_v32  ;;  %v894_v38 = vsel %vm880_vm13, %v1128_v32, 0.0 }
 0x232   : > { %883 = vst.msk [vmem:[%s1479_s19 + $0x10] sm:$0xff] %vm880_vm13, %v851_v33  ;;  %v892_v35 = vsel %vm880_vm13, %v851_v33, 0.0  ;;  %v912_v36 = vmul.f32 %v851_v33, %v851_v33 }
 0x233   : > { %v893_v37 = vadd.f32 %v892_v35, %v891_v29  ;;  %v923_v42 = vsel %vm880_vm13, %v913_v34, 0.0 }
 0x234   : > { %v921_v39 = vsel %vm880_vm13, %v912_v36, 0.0 }
 0x235   : > { %v895_v40 = vadd.f32 %v894_v38, %v893_v37  ;;  %v922_v41 = vadd.f32 %v921_v39, %v920_v31 }
 0x237   : > { %v924_v43 = vadd.f32 %v923_v42, %v922_v41 }
 0x249   : > { %v1131_v44 = vpop.f32.mrb[0].mxu1 }
 0x24a   : > { %886 = vst.msk [vmem:[%s1479_s19 + $0x28] sm:$0xff] %vm880_vm13, %v1131_v44  ;;  %v861_v45 = vpop.f32.mrb[1].mxu1  ;;  %v915_v46 = vmul.f32 %v1131_v44, %v1131_v44  ;;  %v898_v50 = vsel %vm880_vm13, %v1131_v44, 0.0 }
 0x24b   : > { %885 = vst.msk [vmem:[%s1479_s19 + $0x20] sm:$0xff] %vm880_vm13, %v861_v45  ;;  %v896_v47 = vsel %vm880_vm13, %v861_v45, 0.0  ;;  %v914_v48 = vmul.f32 %v861_v45, %v861_v45 }
 0x24c   : > { %v897_v49 = vadd.f32 %v896_v47, %v895_v40  ;;  %v927_v54 = vsel %vm880_vm13, %v915_v46, 0.0 }
 0x24d   : > { %v925_v51 = vsel %vm880_vm13, %v914_v48, 0.0 }
 0x24e   : > { %v926_v52 = vadd.f32 %v925_v51, %v924_v43  ;;  %v899_v53 = vadd.f32 %v898_v50, %v897_v49 }
 0x250   : > { %v928_v55 = vadd.f32 %v927_v54, %v926_v52 }
 0x258   : > { %v1134_v56 = vpop.f32.mrb[2].mxu1 }
 0x259   : > { %888 = vst.msk [vmem:[%s1479_s19 + $0x38] sm:$0xff] %vm880_vm13, %v1134_v56  ;;  %v871_v57 = vpop.f32.mrb[3].mxu1  ;;  %v917_v58 = vmul.f32 %v1134_v56, %v1134_v56  ;;  %v902_v62 = vsel %vm880_vm13, %v1134_v56, 0.0 }
 0x25a   : > { %887 = vst.msk [vmem:[%s1479_s19 + $0x30] sm:$0xff] %vm880_vm13, %v871_v57  ;;  %v900_v59 = vsel %vm880_vm13, %v871_v57, 0.0  ;;  %v916_v60 = vmul.f32 %v871_v57, %v871_v57 }
 0x25b   : > { %v901_v61 = vadd.f32 %v900_v59, %v899_v53  ;;  %v931_v2 = vsel %vm880_vm13, %v917_v58, 0.0 }
 0x25c   : > { %v929_v63 = vsel %vm880_vm13, %v916_v60, 0.0 }
 0x25d   : > { %v903_v0 = vadd.f32 %v902_v62, %v901_v61  ;;  %v930_v1 = vadd.f32 %v929_v63, %v928_v55 }
 0x25f   : > { %v904_v3 = vrot.slane %v903_v0, 4  ;;  %v932_v4 = vadd.f32 %v931_v2, %v930_v1 }
 0x261   : > { %v905_v5 = vadd.f32 %v904_v3, %v903_v0  ;;  %v933_v6 = vrot.slane %v932_v4, 4 }
 0x263   : > { %v906_v7 = vrot.slane %v905_v5, 2  ;;  %v934_v8 = vadd.f32 %v933_v6, %v932_v4 }
 0x265   : > { %v907_v9 = vadd.f32 %v906_v7, %v905_v5  ;;  %v935_v10 = vrot.slane %v934_v8, 2 }
 0x267   : > { %v908_v11 = vrot.slane %v907_v9, 1  ;;  %v936_v12 = vadd.f32 %v935_v10, %v934_v8 }
 0x269   : > { %v909_v14 = vadd.f32 %v908_v11, %v907_v9  ;;  %v937_v15 = vrot.slane %v936_v12, 1 }
 0x26b   : > { %v938_v16 = vadd.f32 %v937_v15, %v936_v12  ;;  %940 = vst.msk [vmem:[%s226_s23] sm:$0x1] %vm939_vm14, %v909_v14 }
 0x26d   : > { %941 = vst.msk [vmem:[%s226_s23 + $0x1] sm:$0x1] %vm939_vm14, %v938_v16 }
 0x26e PF: > { %s14_s14 = sadd.s32 1, %s1205_s14   ;;  %s1530_s12 = smov %s1201_s13 }
 0x26f   : > { %p11_p5 = scmp.ge.s32.totalorder %s14_s14, 4   ;;  %s1531_s13 = smov %s1533_s15 }
 0x271   :  { %13 = sbr.rel (!%p11_p5) target bundleno = 2 (0x2), region = 76 }

// kernel: _lambda_.4
= control target key start
LH: loop header
LB: loop body
LE: loop exit
PB: predicated region body
PF: predicated region fallthrough
CT: control target
= control target key end

     0   :  { %s1371_s21 = smov 0   ;;  %s1373_s22 = smov 0   ;;  %s1684_s0 = inlined_call_operand.vmem [shape: f32[2,8,8,8], index: 0, kind: input, shape index: {}]   ;;  %s1685_s1 = inlined_call_operand.vmem [shape: f32[2,2,8], index: 1, kind: input, shape index: {}]   ;;  %s1686_s2 = inlined_call_operand.vmem [shape: f32[1,8], index: 2, kind: input, shape index: {}]   ;;  %s1687_s3 = inlined_call_operand.vmem [shape: f32[1,8], index: 3, kind: input, shape index: {}]   ;;  %s1688_s4 = inlined_call_operand.vmem [shape: f32[72,8], index: 4, kind: input, shape index: {}]   ;;  %s1689_s5 = inlined_call_operand.vmem [shape: f32[2,8,8,8], index: 5, kind: output, shape index: {0}]   ;;  %s1690_s6 = inlined_call_operand.vmem [shape: f32[2,2,8], index: 6, kind: output, shape index: {1}]  }
   0x1   :  { %s1375_s23 = smov 0  }
   0x2 LB: > { %s26_s24 = sadd.s32 1, %s1320_s22  ;;  %p1175_p0 = scmp.ge.s32.totalorder %s1324_s23, 1  ;;  %s1324_s23 = sphi %s1375_s23, %s17_s23   ;;  %s1320_s22 = sphi %s1373_s22, %s1692_s22   ;;  %s1316_s21 = sphi %s1371_s21, %s1691_s21  }
   0x3   : > { %p27_p1 = scmp.ge.s32.totalorder %s26_s24, 2  ;;  %p240_p2 = scmp.lt.s32.totalorder %s1324_s23, 3 }
   0x5   : > { %s1694_s24 = smov (%p27_p1, %s26_s24), 0  ;;  %p241_p3 = pnand %p1175_p0, %p240_p2 }
   0x6   : > { %vm310_vm0 = vcmask (!%p241_p3), 58368   ;;  %vm388_vm1 = vcmask (!%p241_p3), 64512   ;;  %v308_v0 = vld [vmem:[%s1685_s1] sm:$0x3] (!%p241_p3)  ;;  %v1326_v1 = vmov (!%p241_p3), 0.0   ;;  %vm395_vm2 = vcmask (!%p241_p3), 57344  }
   0x7   : > { %244 = sbr.rel (%p241_p3) target bundleno = 536 (0x218), region = 40  ;;  %389 = vst.msk [vmem:[#allocation2] sm:$0xff] (!%p241_p3), %vm388_vm1, %v1326_v1  ;;  %v309_v2 = vld [vmem:[%s1685_s1 + $0x2] sm:$0x3] (!%p241_p3)  ;;  %v311_v3 = vsel (!%p241_p3), %vm310_vm0, %v308_v0, 0.0  ;;  %392 = vst.msk [vmem:[#allocation2 + $0x90] sm:$0xff] (!%p241_p3), %vm388_vm1, %v1326_v1  ;;  %v328_v15 = vlaneseq (!%p241_p3) }
   0x8   : > { %390 = vst.msk [vmem:[#allocation2 + $0x8] sm:$0x3] (!%p241_p3), %vm310_vm0, %v1326_v1  ;;  %393 = vst.msk [vmem:[#allocation2 + $0x98] sm:$0x3] (!%p241_p3), %vm310_vm0, %v1326_v1  ;;  %v312_v4 = vsel (!%p241_p3), %vm310_vm0, %v309_v2, 0.0  ;;  %s1327_s29 = smov (!%p241_p3), 16  }
   0x9   : > { %v313_v5 = vadd.f32 (!%p241_p3), %v312_v4, %v311_v3  ;;  %404 = vst.msk [vmem:[#allocation2 + $0x19] sm:$0x1] (!%p241_p3), %vm395_vm2, %v1326_v1  ;;  %396 = vst.msk [vmem:[#allocation2 + $0x10] sm:$0x1] (!%p241_p3), %vm395_vm2, %v1326_v1  ;;  %s1328_s30 = smov (!%p241_p3), 8   ;;  %v329_v17 = vshrl.u32 (!%p241_p3), %v328_v15, 7 }
   0xa   : > { %397 = vst.msk [vmem:[#allocation2 + $0x20] sm:$0x1] (!%p241_p3), %vm395_vm2, %v1326_v1  ;;  %398 = vst.msk [vmem:[#allocation2 + $0x30] sm:$0x1] (!%p241_p3), %vm395_vm2, %v1326_v1  ;;  %v1329_v13 = vmov (!%p241_p3), 1966171168  }
   0xb   : > { %399 = vst.msk [vmem:[#allocation2 + $0x40] sm:$0x1] (!%p241_p3), %vm395_vm2, %v1326_v1  ;;  %400 = vst.msk [vmem:[#allocation2 + $0x50] sm:$0x1] (!%p241_p3), %vm395_vm2, %v1326_v1  ;;  %v316_v6 = vmul.f32 (!%p241_p3), 0.0078125, %v313_v5  ;;  %v326_v14 = vunpack.c.l.s4 (!%p241_p3), %v1329_v13  ;;  %p284_p4 = scmp.lt.s32.totalorder (!%p241_p3), %s1316_s21, 1 }
   0xc   : > { %401 = vst.msk [vmem:[#allocation2 + $0x60] sm:$0x1] (!%p241_p3), %vm395_vm2, %v1326_v1  ;;  %402 = vst.msk [vmem:[#allocation2 + $0x70] sm:$0x1] (!%p241_p3), %vm395_vm2, %v1326_v1  ;;  %v314_v22 = vld [vmem:[%s1686_s2] sm:$0x1] (!%p241_p3) }
   0xd   : > { %403 = vst.msk [vmem:[#allocation2 + $0x80] sm:$0x1] (!%p241_p3), %vm395_vm2, %v1326_v1  ;;  %405 = vst.msk [vmem:[#allocation2 + $0x29] sm:$0x1] (!%p241_p3), %vm395_vm2, %v1326_v1  ;;  %v317_v7 = vmul.f32 (!%p241_p3), %v316_v6, %v316_v6  ;;  %v327_v16 = vunpack.c.0.s8 (!%p241_p3), %v326_v14  ;;  %v355_v23 = vsub.s32 (!%p241_p3), 0, %v329_v17  ;;  %s1330_s15 = smov (!%p241_p3), 24  }
   0xe   : > { %406 = vst.msk [vmem:[#allocation2 + $0x39] sm:$0x1] %vm395_vm2, %v1326_v1  ;;  %407 = vst.msk [vmem:[#allocation2 + $0x49] sm:$0x1] %vm395_vm2, %v1326_v1  ;;  %s1696_s21 = smov (!%p284_p4, %s1316_s21), 1  ;;  %v420_v28 = vld [vmem:[#allocation2] sm:$0xff] }
   0xf   : > { %408 = vst.msk [vmem:[#allocation2 + $0x59] sm:$0x1] %vm395_vm2, %v1326_v1  ;;  %409 = vst.msk [vmem:[#allocation2 + $0x69] sm:$0x1] %vm395_vm2, %v1326_v1  ;;  %v485_v8 = vld [vmem:[#allocation2 + $0x2] sm:$0xff]  ;;  %v319_v10 = vrot.slane %v317_v7, 7  ;;  %v330_v18 = vsub.s32 %v327_v16, %v329_v17 }
  0x10   : > { %410 = vst.msk [vmem:[#allocation2 + $0x79] sm:$0x1] %vm395_vm2, %v1326_v1  ;;  %411 = vst.msk [vmem:[#allocation2 + $0x89] sm:$0x1] %vm395_vm2, %v1326_v1  ;;  %v436_v9 = vld [vmem:[#allocation2 + $0x1] sm:$0xff]  ;;  %501 = vrot.lane.b32.xlu1 %v485_v8, %s1327_s29  ;;  %s1191_s7 = sshll.u32 %s1696_s21, 6 }
  0x11   : > { %452 = vrot.lane.b32.xlu0 %v436_v9, %s1328_s30  ;;  %v321_v11 = vsub.f32 %v316_v6, %v319_v10  ;;  %s288_s12 = scalar_lea.vmem %s1684_s0, %s1191_s7  ;;  %v315_v25 = vld [vmem:[%s1687_s3] sm:$0x1]  ;;  %428 = vst.msk [vmem:[#allocation3] sm:$0xff] %vm388_vm1, %v420_v28  ;;  %s1331_s16 = smov 32   ;;  %v838_v13 = vld [vmem:[%s1688_s4 + $0x8] sm:$0xff]  ;;  %v839_v16 = vld [vmem:[%s1688_s4 + $0x10] sm:$0xff] }
  0x12   : > { %v344_v27 = vld [vmem:[%s288_s12] sm:$0xff]  ;;  %v345_v29 = vld [vmem:[%s288_s12 + $0x8] sm:$0xff]  ;;  %v346_v30 = vld [vmem:[%s288_s12 + $0x10] sm:$0xff]  ;;  %s1332_s17 = smov 40   ;;  %s1333_s26 = smov 48   ;;  %vm476_vm3 = vcmask 130112  }
  0x13   : > { %v322_v12 = vadd.f32 1e-05, %v321_v11  ;;  %v347_v31 = vld [vmem:[%s288_s12 + $0x18] sm:$0xff]  ;;  %v348_v34 = vld [vmem:[%s288_s12 + $0x20] sm:$0xff]  ;;  %v349_v35 = vld [vmem:[%s288_s12 + $0x28] sm:$0xff]  ;;  %s1334_s14 = smov 56  }
  0x14   : > { %v350_v36 = vld [vmem:[%s288_s12 + $0x30] sm:$0xff]  ;;  %v351_v37 = vld [vmem:[%s288_s12 + $0x38] sm:$0xff]  ;;  %s1335_s8 = smov 64   ;;  %vm525_vm4 = vcmask 195712   ;;  %vm574_vm5 = vcmask 261312   ;;  %vm623_vm6 = vcmask 326912  }
  0x15   : > { %1300 = vrsqrt.f32 %v322_v12  ;;  %v837_v12 = vld [vmem:[%s1688_s4] sm:$0xff]  ;;  %v840_v17 = vld [vmem:[%s1688_s4 + $0x18] sm:$0xff]  ;;  %vm672_vm7 = vcmask 392512   ;;  %vm722_vm8 = vcmask 458112   ;;  %vm771_vm9 = vcmask 523712  }
  0x16   : > { %v1240_v14 = vpack.c.bf16 %v838_v13, %v837_v12  ;;  %vm820_vm10 = vcmask 589312   ;;  %vm846_vm11 = vcmask 588800  }
  0x18   : > { %1241 = vmatprep.subr.bf16.mxu0 %v1240_v14  ;;  %1256 = vmatprep.subr.bf16.mxu1 %v1240_v14 }
  0x19   : > { %1243 = vmatpush3.bf16.msra.mxu0 %v1240_v14  ;;  %1261 = vmatpush3.bf16.msra.mxu1 %v1240_v14 }
  0x1f   : > { %v1301_v19 = vpop.eup %1300 }
  0x20   : > { %v331_v20 = vrot.slane %v1301_v19, %v330_v18  ;;  %v841_v19 = vld [vmem:[%s1688_s4 + $0x20] sm:$0xff] }
  0x22   : > { %v332_v21 = vcombine.high %v331_v20, %v331_v20  ;;  %v842_v20 = vld [vmem:[%s1688_s4 + $0x28] sm:$0xff] }
  0x24   : > { %v339_v24 = vrot.slane %v332_v21, %v330_v18  ;;  %v1244_v18 = vpack.c.bf16 %v840_v17, %v839_v16  ;;  %v1248_v21 = vpack.c.bf16 %v842_v20, %v841_v19 }
  0x26   : > { %v341_v26 = vmul.f32 %v339_v24, %v314_v22  ;;  %1245 = vmatprep.subr.bf16.mxu0 %v1244_v18  ;;  %1257 = vmatprep.subr.bf16.mxu1 %v1244_v18  ;;  %v843_v22 = vld [vmem:[%s1688_s4 + $0x30] sm:$0xff] }
  0x27   : > { %1247 = vmatpush3.bf16.msra.mxu0 %v1244_v18  ;;  %1262 = vmatpush3.bf16.msra.mxu1 %v1244_v18 }
  0x28   : > { %v342_v32 = vmul.f32 %v341_v26, %v316_v6  ;;  %v356_v33 = vrot.slane %v341_v26, %v355_v23  ;;  %1249 = vmatprep.subr.bf16.mxu0 %v1248_v21  ;;  %1258 = vmatprep.subr.bf16.mxu1 %v1248_v21 }
  0x2a   : > { %v343_v38 = vsub.f32 %v315_v25, %v342_v32  ;;  %v358_v39 = vmul.f32 %v356_v33, %v344_v27  ;;  %v359_v40 = vmul.f32 %v356_v33, %v345_v29  ;;  %v360_v41 = vmul.f32 %v356_v33, %v346_v30  ;;  %v845_v25 = vld [vmem:[%s1688_s4 + $0x40] sm:$0xff] }
  0x2b   : > { %v361_v42 = vmul.f32 %v356_v33, %v347_v31  ;;  %v362_v43 = vmul.f32 %v356_v33, %v348_v34  ;;  %v363_v44 = vmul.f32 %v356_v33, %v349_v35  ;;  %v364_v45 = vmul.f32 %v356_v33, %v350_v36  ;;  %1251 = vmatpush3.bf16.msra.mxu0 %v1248_v21 }
  0x2c   : > { %v370_v46 = vrot.slane %v343_v38, %v355_v23  ;;  %v365_v47 = vmul.f32 %v356_v33, %v351_v37  ;;  %v844_v23 = vld [vmem:[%s1688_s4 + $0x38] sm:$0xff]  ;;  %1263 = vmatpush3.bf16.msra.mxu1 %v1248_v21 }
  0x2d   : > { %v1252_v24 = vpack.c.bf16 %v844_v23, %v843_v22 }
  0x2e   : > { %v372_v48 = vadd.f32 %v370_v46, %v358_v39  ;;  %v373_v49 = vadd.f32 %v370_v46, %v359_v40  ;;  %v374_v50 = vadd.f32 %v370_v46, %v360_v41  ;;  %v375_v51 = vadd.f32 %v370_v46, %v361_v42  ;;  %v689_v39 = vld [vmem:[#allocation2 + $0x90] sm:$0xff] }
  0x2f   : > { %v376_v52 = vadd.f32 %v370_v46, %v362_v43  ;;  %v377_v53 = vadd.f32 %v370_v46, %v363_v44  ;;  %v378_v54 = vadd.f32 %v370_v46, %v364_v45  ;;  %v379_v55 = vadd.f32 %v370_v46, %v365_v47  ;;  %1253 = vmatprep.subr.bf16.mxu0 %v1252_v24  ;;  %v738_v40 = vld [vmem:[#allocation2 + $0x91] sm:$0xff] }
  0x30   : > { %v380_v56 = vmax.f32 %v372_v48, 0.0  ;;  %v381_v57 = vmax.f32 %v373_v49, 0.0  ;;  %v382_v58 = vmax.f32 %v374_v50, 0.0  ;;  %v383_v59 = vmax.f32 %v375_v51, 0.0  ;;  %1259 = vmatprep.subr.bf16.mxu1 %v1252_v24  ;;  %1255 = vmatpush3.bf16.msra.mxu0 %v1252_v24  ;;  %v787_v43 = vld [vmem:[#allocation2 + $0x92] sm:$0xff] }
  0x31   : > { %v384_v60 = vmax.f32 %v376_v52, 0.0  ;;  %v385_v61 = vmax.f32 %v377_v53, 0.0  ;;  %v386_v62 = vmax.f32 %v378_v54, 0.0  ;;  %v387_v63 = vmax.f32 %v379_v55, 0.0  ;;  %1264 = vmatpush3.bf16.msra.mxu1 %v1252_v24  ;;  %1226 = vmatprep.subr.mxu0 %v845_v25 }
  0x32   : > { %412 = vst.msk [vmem:[#allocation2 + $0x11] sm:$0xff] %vm388_vm1, %v380_v56  ;;  %413 = vst.msk [vmem:[#allocation2 + $0x21] sm:$0xff] %vm388_vm1, %v381_v57  ;;  %1260 = vmatprep.subr.mxu1 %v845_v25 }
  0x33   : > { %414 = vst.msk [vmem:[#allocation2 + $0x31] sm:$0xff] %vm388_vm1, %v382_v58  ;;  %415 = vst.msk [vmem:[#allocation2 + $0x41] sm:$0xff] %vm388_vm1, %v383_v59 }
  0x34   : > { %416 = vst.msk [vmem:[#allocation2 + $0x51] sm:$0xff] %vm388_vm1, %v384_v60  ;;  %417 = vst.msk [vmem:[#allocation2 + $0x61] sm:$0xff] %vm388_vm1, %v385_v61  ;;  %1227 = vmatpush3.msra.mxu0 %v845_v25 }
  0x35   : > { %418 = vst.msk [vmem:[#allocation2 + $0x71] sm:$0xff] %vm388_vm1, %v386_v62  ;;  %419 = vst.msk [vmem:[#allocation2 + $0x81] sm:$0xff] %vm388_vm1, %v387_v63  ;;  %1265 = vmatpush3.msra.mxu1 %v845_v25 }
  0x39   : > { %v486_v0 = vld [vmem:[#allocation2 + $0x12] sm:$0xff]  ;;  %v535_v2 = vld [vmem:[#allocation2 + $0x20] sm:$0xff] }
  0x3a   : > { %v437_v1 = vld [vmem:[#allocation2 + $0x11] sm:$0xff]  ;;  %503 = vrot.lane.b32.xlu1 %v486_v0, %s1327_s29  ;;  %430 = vst.msk [vmem:[#allocation3 + $0x10] sm:$0xff] %vm388_vm1, %v535_v2  ;;  %v1446_v5 = vld [vmem:[#allocation2 + $0x40] sm:$0xff] }
  0x3b   : > { %454 = vrot.lane.b32.xlu0 %v437_v1, %s1328_s30  ;;  %v534_v3 = vld [vmem:[#allocation2 + $0x10] sm:$0xff]  ;;  %432 = vst.msk [vmem:[#allocation3 + $0x20] sm:$0xff] %vm388_vm1, %v1446_v5  ;;  %v1455_v7 = vld [vmem:[#allocation2 + $0x60] sm:$0xff] }
  0x3c   : > { %v536_v4 = vld [vmem:[#allocation2 + $0x30] sm:$0xff]  ;;  %429 = vst.msk [vmem:[#allocation3 + $0x8] sm:$0xff] %vm388_vm1, %v534_v3  ;;  %v438_v8 = vld [vmem:[#allocation2 + $0x21] sm:$0xff]  ;;  %434 = vst.msk [vmem:[#allocation3 + $0x30] sm:$0xff] %vm388_vm1, %v1455_v7 }
  0x3d   : > { %431 = vst.msk [vmem:[#allocation3 + $0x18] sm:$0xff] %vm388_vm1, %v536_v4  ;;  %v1449_v6 = vld [vmem:[#allocation2 + $0x50] sm:$0xff]  ;;  %v487_v10 = vld [vmem:[#allocation2 + $0x22] sm:$0xff] }
  0x3e   : > { %552 = vrot.lane.b32.xlu1 %v535_v2, %s1330_s15  ;;  %433 = vst.msk [vmem:[#allocation3 + $0x28] sm:$0xff] %vm388_vm1, %v1449_v6  ;;  %v1459_v9 = vld [vmem:[#allocation2 + $0x70] sm:$0xff]  ;;  %v586_v26 = vld [vmem:[#allocation2 + $0x41] sm:$0xff] }
  0x3f   : > { %550 = vrot.lane.b32.xlu0 %v534_v3, %s1330_s15  ;;  %435 = vst.msk [vmem:[#allocation3 + $0x38] sm:$0xff] %vm388_vm1, %v1459_v9  ;;  %v439_v11 = vld [vmem:[#allocation2 + $0x31] sm:$0xff]  ;;  %v489_v27 = vld [vmem:[#allocation2 + $0x42] sm:$0xff] }
  0x40   : > { %v488_v15 = vld [vmem:[#allocation2 + $0x32] sm:$0xff]  ;;  %v588_v30 = vld [vmem:[#allocation2 + $0x61] sm:$0xff] }
  0x41   : > { %v441_v28 = vld [vmem:[#allocation2 + $0x51] sm:$0xff]  ;;  %v491_v34 = vld [vmem:[#allocation2 + $0x62] sm:$0xff] }
  0x42   : > { %456 = vrot.lane.b32.xlu1 %v438_v8, %s1328_s30  ;;  %v490_v29 = vld [vmem:[#allocation2 + $0x52] sm:$0xff]  ;;  %v541_v36 = vld [vmem:[#allocation2 + $0x80] sm:$0xff] }
  0x43   : > { %599 = vrot.lane.b32.xlu0 %v437_v1, %s1331_s16  ;;  %v443_v33 = vld [vmem:[#allocation2 + $0x71] sm:$0xff]  ;;  %v590_v37 = vld [vmem:[#allocation2 + $0x81] sm:$0xff] }
  0x44   : > { %v492_v35 = vld [vmem:[#allocation2 + $0x72] sm:$0xff]  ;;  %v639_v38 = vld [vmem:[#allocation2 + $0x82] sm:$0xff] }
  0x46   : > { %648 = vrot.lane.b32.xlu1 %v486_v0, %s1332_s17 }
  0x47   : > { %601 = vrot.lane.b32.xlu0 %v438_v8, %s1331_s16 }
  0x4a   : > { %505 = vrot.lane.b32.xlu1 %v487_v10, %s1327_s29 }
  0x4b   : > { %458 = vrot.lane.b32.xlu0 %v439_v11, %s1328_s30 }
  0x4e   : > { %698 = vrot.lane.b32.xlu1 %v535_v2, %s1333_s26 }
  0x4f   : > { %650 = vrot.lane.b32.xlu0 %v487_v10, %s1332_s17 }
  0x52   : > { %554 = vrot.lane.b32.xlu1 %v536_v4, %s1330_s15 }
  0x53   : > { %507 = vrot.lane.b32.xlu0 %v488_v15, %s1327_s29 }
  0x56   : > { %747 = vrot.lane.b32.xlu1 %v438_v8, %s1334_s14 }
  0x57   : > { %700 = vrot.lane.b32.xlu0 %v536_v4, %s1333_s26 }
  0x5a   : > { %603 = vrot.lane.b32.xlu1 %v439_v11, %s1331_s16 }
  0x5b   : > { %556 = vrot.lane.b32.xlu0 %v1446_v5, %s1330_s15 }
  0x5e   : > { %796 = vrot.lane.b32.xlu1 %v487_v10, %s1335_s8 }
  0x5f   : > { %749 = vrot.lane.b32.xlu0 %v439_v11, %s1334_s14 }
  0x62   : > { %605 = vrot.lane.b32.xlu1 %v586_v26, %s1331_s16 }
  0x63   : > { %460 = vrot.lane.b32.xlu0 %v586_v26, %s1328_s30 }
  0x66   : > { %798 = vrot.lane.b32.xlu1 %v488_v15, %s1335_s8 }
  0x67   : > { %652 = vrot.lane.b32.xlu0 %v488_v15, %s1332_s17 }
  0x6a   : > { %509 = vrot.lane.b32.xlu1 %v489_v27, %s1327_s29 }
  0x6b   : > { %462 = vrot.lane.b32.xlu0 %v441_v28, %s1328_s30 }
  0x6e   : > { %702 = vrot.lane.b32.xlu1 %v1446_v5, %s1333_s26 }
  0x6f   : > { %654 = vrot.lane.b32.xlu0 %v489_v27, %s1332_s17 }
  0x72   : > { %558 = vrot.lane.b32.xlu1 %v1449_v6, %s1330_s15 }
  0x73   : > { %511 = vrot.lane.b32.xlu0 %v490_v29, %s1327_s29 }
  0x76   : > { %751 = vrot.lane.b32.xlu1 %v586_v26, %s1334_s14 }
  0x77   : > { %704 = vrot.lane.b32.xlu0 %v1449_v6, %s1333_s26 }
  0x7a   : > { %607 = vrot.lane.b32.xlu1 %v441_v28, %s1331_s16 }
  0x7b   : > { %560 = vrot.lane.b32.xlu0 %v1455_v7, %s1330_s15 }
  0x7e   : > { %800 = vrot.lane.b32.xlu1 %v489_v27, %s1335_s8 }
  0x7f   : > { %753 = vrot.lane.b32.xlu0 %v441_v28, %s1334_s14 }
  0x82   : > { %v502_v31 = vpop.permute.xlu1 %501  ;;  %609 = vrot.lane.b32.xlu1 %v588_v30, %s1331_s16 }
  0x83   : > { %v453_v32 = vpop.permute.xlu0 %452  ;;  %464 = vrot.lane.b32.xlu0 %v588_v30, %s1328_s30 }
  0x84   : > { %477 = vst.msk [vmem:[#allocation3] sm:$0xff] %vm476_vm3, %v453_v32 }
  0x85   : > { %526 = vst.msk [vmem:[#allocation3] sm:$0xff] %vm525_vm4, %v502_v31 }
  0x86   : > { %802 = vrot.lane.b32.xlu1 %v490_v29, %s1335_s8 }
  0x87   : > { %656 = vrot.lane.b32.xlu0 %v490_v29, %s1332_s17 }
  0x8a   : > { %513 = vrot.lane.b32.xlu1 %v491_v34, %s1327_s29 }
  0x8b   : > { %466 = vrot.lane.b32.xlu0 %v443_v33, %s1328_s30 }
  0x8e   : > { %706 = vrot.lane.b32.xlu1 %v1455_v7, %s1333_s26 }
  0x8f   : > { %658 = vrot.lane.b32.xlu0 %v491_v34, %s1332_s17 }
  0x92   : > { %562 = vrot.lane.b32.xlu1 %v1459_v9, %s1330_s15 }
  0x93   : > { %515 = vrot.lane.b32.xlu0 %v492_v35, %s1327_s29 }
  0x96   : > { %755 = vrot.lane.b32.xlu1 %v588_v30, %s1334_s14 }
  0x97   : > { %708 = vrot.lane.b32.xlu0 %v1459_v9, %s1333_s26 }
  0x9a   : > { %611 = vrot.lane.b32.xlu1 %v443_v33, %s1331_s16 }
  0x9b   : > { %564 = vrot.lane.b32.xlu0 %v541_v36, %s1330_s15  ;;  %s1635_s15 = scalar_lea.vmem %s1689_s5, %s1191_s7  ;;  %s1180_s7 = sshll.u32 %s1696_s21, 1 }
  0x9e   : > { %804 = vrot.lane.b32.xlu1 %v491_v34, %s1335_s8 }
  0x9f   : > { %757 = vrot.lane.b32.xlu0 %v443_v33, %s1334_s14 }
  0xa2   : > { %660 = vrot.lane.b32.xlu1 %v492_v35, %s1332_s17 }
  0xa3   : > { %613 = vrot.lane.b32.xlu0 %v590_v37, %s1331_s16 }
  0xa6   : > { %662 = vrot.lane.b32.xlu1 %v639_v38, %s1332_s17 }
  0xa7   : > { %806 = vrot.lane.b32.xlu0 %v492_v35, %s1335_s8 }
  0xaa   : > { %712 = vrot.lane.b32.xlu1 %v689_v39, %s1333_s26 }
  0xab   : > { %710 = vrot.lane.b32.xlu0 %v541_v36, %s1333_s26  ;;  %s307_s26 = scalar_lea.vmem %s1690_s6, %s1180_s7 }
  0xac   : > { %v504_v41 = vpop.permute.xlu1 %503 }
  0xad   : > { %v455_v42 = vpop.permute.xlu0 %454 }
  0xae   : > { %478 = vst.msk [vmem:[#allocation3 + $0x8] sm:$0xff] %vm476_vm3, %v455_v42  ;;  %761 = vrot.lane.b32.xlu1 %v738_v40, %s1334_s14 }
  0xaf   : > { %759 = vrot.lane.b32.xlu0 %v590_v37, %s1334_s14  ;;  %527 = vst.msk [vmem:[#allocation3 + $0x8] sm:$0xff] %vm525_vm4, %v504_v41 }
  0xb0   : > { %v553_v44 = vpop.permute.xlu1 %552 }
  0xb1   : > { %v551_v45 = vpop.permute.xlu0 %550  ;;  %576 = vst.msk [vmem:[#allocation3 + $0x8] sm:$0xff] %vm574_vm5, %v553_v44 }
  0xb2   : > { %575 = vst.msk [vmem:[#allocation3] sm:$0xff] %vm574_vm5, %v551_v45  ;;  %810 = vrot.lane.b32.xlu1 %v787_v43, %s1335_s8 }
  0xb3   : > { %808 = vrot.lane.b32.xlu0 %v639_v38, %s1335_s8 }
  0xb4   : > { %v457_v46 = vpop.permute.xlu1 %456 }
  0xb5   : > { %v600_v47 = vpop.permute.xlu0 %599  ;;  %479 = vst.msk [vmem:[#allocation3 + $0x10] sm:$0xff] %vm476_vm3, %v457_v46 }
  0xb6   : > { %624 = vst.msk [vmem:[#allocation3] sm:$0xff] %vm623_vm6, %v600_v47 }
  0xb8   : > { %v649_v48 = vpop.permute.xlu1 %648 }
  0xb9   : > { %v602_v49 = vpop.permute.xlu0 %601  ;;  %673 = vst.msk [vmem:[#allocation3] sm:$0xff] %vm672_vm7, %v649_v48 }
  0xba   : > { %625 = vst.msk [vmem:[#allocation3 + $0x8] sm:$0xff] %vm623_vm6, %v602_v49 }
  0xbc   : > { %v506_v50 = vpop.permute.xlu1 %505 }
  0xbd   : > { %v459_v51 = vpop.permute.xlu0 %458  ;;  %528 = vst.msk [vmem:[#allocation3 + $0x10] sm:$0xff] %vm525_vm4, %v506_v50 }
  0xbe   : > { %480 = vst.msk [vmem:[#allocation3 + $0x18] sm:$0xff] %vm476_vm3, %v459_v51 }
  0xc0   : > { %v699_v52 = vpop.permute.xlu1 %698 }
  0xc1   : > { %v651_v53 = vpop.permute.xlu0 %650  ;;  %723 = vst.msk [vmem:[#allocation3] sm:$0xff] %vm722_vm8, %v699_v52 }
  0xc2   : > { %674 = vst.msk [vmem:[#allocation3 + $0x8] sm:$0xff] %vm672_vm7, %v651_v53 }
  0xc4   : > { %v555_v54 = vpop.permute.xlu1 %554 }
  0xc5   : > { %v508_v55 = vpop.permute.xlu0 %507  ;;  %577 = vst.msk [vmem:[#allocation3 + $0x10] sm:$0xff] %vm574_vm5, %v555_v54 }
  0xc6   : > { %529 = vst.msk [vmem:[#allocation3 + $0x18] sm:$0xff] %vm525_vm4, %v508_v55 }
  0xc8   : > { %v748_v56 = vpop.permute.xlu1 %747 }
  0xc9   : > { %v701_v57 = vpop.permute.xlu0 %700  ;;  %772 = vst.msk [vmem:[#allocation3] sm:$0xff] %vm771_vm9, %v748_v56 }
  0xca   : > { %724 = vst.msk [vmem:[#allocation3 + $0x8] sm:$0xff] %vm722_vm8, %v701_v57 }
  0xcc   : > { %v604_v58 = vpop.permute.xlu1 %603 }
  0xcd   : > { %v557_v59 = vpop.permute.xlu0 %556  ;;  %626 = vst.msk [vmem:[#allocation3 + $0x10] sm:$0xff] %vm623_vm6, %v604_v58 }
  0xce   : > { %578 = vst.msk [vmem:[#allocation3 + $0x18] sm:$0xff] %vm574_vm5, %v557_v59 }
  0xd0   : > { %v797_v60 = vpop.permute.xlu1 %796 }
  0xd1   : > { %v750_v61 = vpop.permute.xlu0 %749  ;;  %821 = vst.msk [vmem:[#allocation3] sm:$0xff] %vm820_vm10, %v797_v60 }
  0xd2   : > { %773 = vst.msk [vmem:[#allocation3 + $0x8] sm:$0xff] %vm771_vm9, %v750_v61 }
  0xd4   : > { %v606_v62 = vpop.permute.xlu1 %605 }
  0xd5   : > { %v461_v63 = vpop.permute.xlu0 %460  ;;  %627 = vst.msk [vmem:[#allocation3 + $0x18] sm:$0xff] %vm623_vm6, %v606_v62 }
  0xd6   : > { %481 = vst.msk [vmem:[#allocation3 + $0x20] sm:$0xff] %vm476_vm3, %v461_v63 }
  0xd8   : > { %v799_v0 = vpop.permute.xlu1 %798  ;;  %v829_v2 = vld [vmem:[#allocation3] sm:$0xff] }
  0xd9   : > { %v653_v1 = vpop.permute.xlu0 %652  ;;  %822 = vst.msk [vmem:[#allocation3 + $0x8] sm:$0xff] %vm820_vm10, %v799_v0  ;;  %1228 = vmatprep.mubr.msk.f32.mxu0 %vm846_vm11, %v829_v2 }
  0xda   : > { %675 = vst.msk [vmem:[#allocation3 + $0x10] sm:$0xff] %vm672_vm7, %v653_v1 }
  0xdc   : > { %v510_v3 = vpop.permute.xlu1 %509 }
  0xdd   : > { %v463_v4 = vpop.permute.xlu0 %462  ;;  %530 = vst.msk [vmem:[#allocation3 + $0x20] sm:$0xff] %vm525_vm4, %v510_v3 }
  0xde   : > { %482 = vst.msk [vmem:[#allocation3 + $0x28] sm:$0xff] %vm476_vm3, %v463_v4 }
  0xe0   : > { %v703_v5 = vpop.permute.xlu1 %702  ;;  %v830_v7 = vld [vmem:[#allocation3 + $0x8] sm:$0xff] }
  0xe1   : > { %v655_v6 = vpop.permute.xlu0 %654  ;;  %725 = vst.msk [vmem:[#allocation3 + $0x10] sm:$0xff] %vm722_vm8, %v703_v5  ;;  %1229 = vmatmul.mubr.msk.f32.vlgmr.msra.gmra.mrb[0].mxu0 %vm846_vm11, %v830_v7 }
  0xe2   : > { %676 = vst.msk [vmem:[#allocation3 + $0x18] sm:$0xff] %vm672_vm7, %v655_v6 }
  0xe4   : > { %v559_v8 = vpop.permute.xlu1 %558 }
  0xe5   : > { %v512_v9 = vpop.permute.xlu0 %511  ;;  %579 = vst.msk [vmem:[#allocation3 + $0x20] sm:$0xff] %vm574_vm5, %v559_v8 }
  0xe6   : > { %531 = vst.msk [vmem:[#allocation3 + $0x28] sm:$0xff] %vm525_vm4, %v512_v9 }
  0xe8   : > { %v752_v10 = vpop.permute.xlu1 %751 }
  0xe9   : > { %v705_v11 = vpop.permute.xlu0 %704  ;;  %774 = vst.msk [vmem:[#allocation3 + $0x10] sm:$0xff] %vm771_vm9, %v752_v10 }
  0xea   : > { %726 = vst.msk [vmem:[#allocation3 + $0x18] sm:$0xff] %vm722_vm8, %v705_v11 }
  0xec   : > { %v608_v12 = vpop.permute.xlu1 %607 }
  0xed   : > { %v561_v13 = vpop.permute.xlu0 %560  ;;  %628 = vst.msk [vmem:[#allocation3 + $0x20] sm:$0xff] %vm623_vm6, %v608_v12 }
  0xee   : > { %580 = vst.msk [vmem:[#allocation3 + $0x28] sm:$0xff] %vm574_vm5, %v561_v13 }
  0xf0   : > { %v801_v14 = vpop.permute.xlu1 %800 }
  0xf1   : > { %v754_v15 = vpop.permute.xlu0 %753  ;;  %823 = vst.msk [vmem:[#allocation3 + $0x10] sm:$0xff] %vm820_vm10, %v801_v14 }
  0xf2   : > { %775 = vst.msk [vmem:[#allocation3 + $0x18] sm:$0xff] %vm771_vm9, %v754_v15 }
  0xf4   : > { %v610_v16 = vpop.permute.xlu1 %609 }
  0xf5   : > { %v465_v17 = vpop.permute.xlu0 %464  ;;  %629 = vst.msk [vmem:[#allocation3 + $0x28] sm:$0xff] %vm623_vm6, %v610_v16 }
  0xf6   : > { %483 = vst.msk [vmem:[#allocation3 + $0x30] sm:$0xff] %vm476_vm3, %v465_v17 }
  0xf8   : > { %v803_v18 = vpop.permute.xlu1 %802  ;;  %v831_v20 = vld [vmem:[#allocation3 + $0x10] sm:$0xff] }
  0xf9   : > { %v657_v19 = vpop.permute.xlu0 %656  ;;  %824 = vst.msk [vmem:[#allocation3 + $0x18] sm:$0xff] %vm820_vm10, %v803_v18  ;;  %1231 = vmatprep.mubr.msk.f32.mxu0 %vm846_vm11, %v831_v20 }
  0xfa   : > { %677 = vst.msk [vmem:[#allocation3 + $0x20] sm:$0xff] %vm672_vm7, %v657_v19 }
  0xfc   : > { %v514_v22 = vpop.permute.xlu1 %513 }
  0xfd   : > { %v467_v21 = vpop.permute.xlu0 %466  ;;  %532 = vst.msk [vmem:[#allocation3 + $0x30] sm:$0xff] %vm525_vm4, %v514_v22 }
  0xfe   : > { %484 = vst.msk [vmem:[#allocation3 + $0x38] sm:$0xff] %vm476_vm3, %v467_v21 }
 0x100   : > { %v707_v24 = vpop.permute.xlu1 %706  ;;  %v832_v25 = vld [vmem:[#allocation3 + $0x18] sm:$0xff] }
 0x101   : > { %v659_v23 = vpop.permute.xlu0 %658  ;;  %727 = vst.msk [vmem:[#allocation3 + $0x20] sm:$0xff] %vm722_vm8, %v707_v24  ;;  %1232 = vmatmul.mubr.msk.f32.gmra.mrb[2].mxu0 %vm846_vm11, %v832_v25 }
 0x102   : > { %678 = vst.msk [vmem:[#allocation3 + $0x28] sm:$0xff] %vm672_vm7, %v659_v23 }
 0x104   : > { %v563_v27 = vpop.permute.xlu1 %562 }
 0x105   : > { %v516_v26 = vpop.permute.xlu0 %515  ;;  %581 = vst.msk [vmem:[#allocation3 + $0x30] sm:$0xff] %vm574_vm5, %v563_v27 }
 0x106   : > { %533 = vst.msk [vmem:[#allocation3 + $0x38] sm:$0xff] %vm525_vm4, %v516_v26 }
 0x108   : > { %v756_v29 = vpop.permute.xlu1 %755 }
 0x109   : > { %v709_v28 = vpop.permute.xlu0 %708  ;;  %776 = vst.msk [vmem:[#allocation3 + $0x20] sm:$0xff] %vm771_vm9, %v756_v29 }
 0x10a   : > { %728 = vst.msk [vmem:[#allocation3 + $0x28] sm:$0xff] %vm722_vm8, %v709_v28 }
 0x10c   : > { %v612_v31 = vpop.permute.xlu1 %611 }
 0x10d   : > { %v565_v30 = vpop.permute.xlu0 %564  ;;  %630 = vst.msk [vmem:[#allocation3 + $0x30] sm:$0xff] %vm623_vm6, %v612_v31 }
 0x10e   : > { %582 = vst.msk [vmem:[#allocation3 + $0x38] sm:$0xff] %vm574_vm5, %v565_v30 }
 0x110   : > { %v805_v33 = vpop.permute.xlu1 %804 }
 0x111   : > { %v758_v32 = vpop.permute.xlu0 %757  ;;  %825 = vst.msk [vmem:[#allocation3 + $0x20] sm:$0xff] %vm820_vm10, %v805_v33 }
 0x112   : > { %777 = vst.msk [vmem:[#allocation3 + $0x28] sm:$0xff] %vm771_vm9, %v758_v32 }
 0x114   : > { %v661_v35 = vpop.permute.xlu1 %660 }
 0x115   : > { %v614_v34 = vpop.permute.xlu0 %613  ;;  %679 = vst.msk [vmem:[#allocation3 + $0x30] sm:$0xff] %vm672_vm7, %v661_v35 }
 0x116   : > { %631 = vst.msk [vmem:[#allocation3 + $0x38] sm:$0xff] %vm623_vm6, %v614_v34 }
 0x118   : > { %v663_v37 = vpop.permute.xlu1 %662  ;;  %v833_v38 = vld [vmem:[#allocation3 + $0x20] sm:$0xff] }
 0x119   : > { %v807_v36 = vpop.permute.xlu0 %806  ;;  %680 = vst.msk [vmem:[#allocation3 + $0x38] sm:$0xff] %vm672_vm7, %v663_v37  ;;  %1234 = vmatprep.mubr.msk.f32.mxu1 %vm846_vm11, %v833_v38 }
 0x11a   : > { %826 = vst.msk [vmem:[#allocation3 + $0x28] sm:$0xff] %vm820_vm10, %v807_v36 }
 0x11c   : > { %v713_v40 = vpop.permute.xlu1 %712 }
 0x11d   : > { %v711_v39 = vpop.permute.xlu0 %710  ;;  %730 = vst.msk [vmem:[#allocation3 + $0x38] sm:$0xff] %vm722_vm8, %v713_v40 }
 0x11e   : > { %729 = vst.msk [vmem:[#allocation3 + $0x30] sm:$0xff] %vm722_vm8, %v711_v39 }
 0x120   : > { %v762_v42 = vpop.permute.xlu1 %761 }
 0x121   : > { %v760_v41 = vpop.permute.xlu0 %759  ;;  %v834_v43 = vld [vmem:[#allocation3 + $0x28] sm:$0xff]  ;;  %779 = vst.msk [vmem:[#allocation3 + $0x38] sm:$0xff] %vm771_vm9, %v762_v42 }
 0x122   : > { %778 = vst.msk [vmem:[#allocation3 + $0x30] sm:$0xff] %vm771_vm9, %v760_v41  ;;  %1235 = vmatmul.mubr.msk.f32.vlgmr.msra.gmra.mrb[0].mxu1 %vm846_vm11, %v834_v43 }
 0x124   : > { %v811_v45 = vpop.permute.xlu1 %810 }
 0x125   : > { %v809_v44 = vpop.permute.xlu0 %808  ;;  %828 = vst.msk [vmem:[#allocation3 + $0x38] sm:$0xff] %vm820_vm10, %v811_v45 }
 0x126   : > { %827 = vst.msk [vmem:[#allocation3 + $0x30] sm:$0xff] %vm820_vm10, %v809_v44 }
 0x12c   : > { %v836_v47 = vld [vmem:[#allocation3 + $0x38] sm:$0xff] }
 0x12d   : > { %v835_v46 = vld [vmem:[#allocation3 + $0x30] sm:$0xff] }
 0x12e   : > { %1237 = vmatprep.mubr.msk.f32.mxu1 %vm846_vm11, %v835_v46 }
 0x12f   : > { %1238 = vmatmul.mubr.msk.f32.gmra.mrb[2].mxu1 %vm846_vm11, %v836_v47 }
 0x1b4   : > { %v1230_v48 = vpop.f32.mrb[0].mxu0 }
 0x1b5   : > { %977 = vst.msk [vmem:[%s1635_s15 + $0x8] sm:$0xff] %vm388_vm1, %v1230_v48  ;;  %v985_v49 = vsel %vm388_vm1, %v1230_v48, 0.0  ;;  %v1006_v50 = vmul.f32 %v1230_v48, %v1230_v48  ;;  %v937_v51 = vpop.f32.mrb[1].mxu0 }
 0x1b6   : > { %976 = vst.msk [vmem:[%s1635_s15] sm:$0xff] %vm388_vm1, %v937_v51  ;;  %v984_v52 = vsel %vm388_vm1, %v937_v51, 0.0  ;;  %v1005_v53 = vmul.f32 %v937_v51, %v937_v51 }
 0x1b7   : > { %v1014_v54 = vsel %vm388_vm1, %v1006_v50, 0.0  ;;  %v986_v55 = vadd.f32 %v985_v49, %v984_v52 }
 0x1b8   : > { %v1013_v56 = vsel %vm388_vm1, %v1005_v53, 0.0 }
 0x1b9   : > { %v1015_v57 = vadd.f32 %v1014_v54, %v1013_v56 }
 0x1d4   : > { %v1233_v58 = vpop.f32.mrb[2].mxu0 }
 0x1d5   : > { %979 = vst.msk [vmem:[%s1635_s15 + $0x18] sm:$0xff] %vm388_vm1, %v1233_v58  ;;  %v947_v59 = vpop.f32.mrb[3].mxu0  ;;  %v1008_v60 = vmul.f32 %v1233_v58, %v1233_v58  ;;  %v989_v0 = vsel %vm388_vm1, %v1233_v58, 0.0 }
 0x1d6   : > { %978 = vst.msk [vmem:[%s1635_s15 + $0x10] sm:$0xff] %vm388_vm1, %v947_v59  ;;  %v987_v61 = vsel %vm388_vm1, %v947_v59, 0.0  ;;  %v1007_v62 = vmul.f32 %v947_v59, %v947_v59 }
 0x1d7   : > { %v988_v63 = vadd.f32 %v987_v61, %v986_v55  ;;  %v1018_v4 = vsel %vm388_vm1, %v1008_v60, 0.0 }
 0x1d8   : > { %v1016_v1 = vsel %vm388_vm1, %v1007_v62, 0.0 }
 0x1d9   : > { %v990_v2 = vadd.f32 %v989_v0, %v988_v63  ;;  %v1017_v3 = vadd.f32 %v1016_v1, %v1015_v57 }
 0x1db   : > { %v1019_v5 = vadd.f32 %v1018_v4, %v1017_v3 }
 0x1f5   : > { %v1236_v6 = vpop.f32.mrb[0].mxu1 }
 0x1f6   : > { %981 = vst.msk [vmem:[%s1635_s15 + $0x28] sm:$0xff] %vm388_vm1, %v1236_v6  ;;  %v957_v7 = vpop.f32.mrb[1].mxu1  ;;  %v1010_v8 = vmul.f32 %v1236_v6, %v1236_v6  ;;  %v993_v12 = vsel %vm388_vm1, %v1236_v6, 0.0 }
 0x1f7   : > { %980 = vst.msk [vmem:[%s1635_s15 + $0x20] sm:$0xff] %vm388_vm1, %v957_v7  ;;  %v991_v9 = vsel %vm388_vm1, %v957_v7, 0.0  ;;  %v1009_v10 = vmul.f32 %v957_v7, %v957_v7 }
 0x1f8   : > { %v992_v11 = vadd.f32 %v991_v9, %v990_v2  ;;  %v1022_v16 = vsel %vm388_vm1, %v1010_v8, 0.0 }
 0x1f9   : > { %v1020_v13 = vsel %vm388_vm1, %v1009_v10, 0.0 }
 0x1fa   : > { %v1021_v14 = vadd.f32 %v1020_v13, %v1019_v5  ;;  %v994_v15 = vadd.f32 %v993_v12, %v992_v11 }
 0x1fc   : > { %v1023_v17 = vadd.f32 %v1022_v16, %v1021_v14 }
 0x202   : > { %v1239_v18 = vpop.f32.mrb[2].mxu1 }
 0x203   : > { %983 = vst.msk [vmem:[%s1635_s15 + $0x38] sm:$0xff] %vm388_vm1, %v1239_v18  ;;  %v967_v19 = vpop.f32.mrb[3].mxu1  ;;  %v1012_v20 = vmul.f32 %v1239_v18, %v1239_v18  ;;  %v997_v24 = vsel %vm388_vm1, %v1239_v18, 0.0 }
 0x204   : > { %982 = vst.msk [vmem:[%s1635_s15 + $0x30] sm:$0xff] %vm388_vm1, %v967_v19  ;;  %v995_v21 = vsel %vm388_vm1, %v967_v19, 0.0  ;;  %v1011_v22 = vmul.f32 %v967_v19, %v967_v19 }
 0x205   : > { %v996_v23 = vadd.f32 %v995_v21, %v994_v15  ;;  %v1026_v28 = vsel %vm388_vm1, %v1012_v20, 0.0 }
 0x206   : > { %v1024_v25 = vsel %vm388_vm1, %v1011_v22, 0.0 }
 0x207   : > { %v998_v26 = vadd.f32 %v997_v24, %v996_v23  ;;  %v1025_v27 = vadd.f32 %v1024_v25, %v1023_v17 }
 0x209   : > { %v999_v29 = vrot.slane %v998_v26, 4  ;;  %v1027_v30 = vadd.f32 %v1026_v28, %v1025_v27 }
 0x20b   : > { %v1000_v31 = vadd.f32 %v999_v29, %v998_v26  ;;  %v1028_v32 = vrot.slane %v1027_v30, 4 }
 0x20d   : > { %v1001_v33 = vrot.slane %v1000_v31, 2  ;;  %v1029_v34 = vadd.f32 %v1028_v32, %v1027_v30 }
 0x20f   : > { %v1002_v35 = vadd.f32 %v1001_v33, %v1000_v31  ;;  %v1030_v36 = vrot.slane %v1029_v34, 2 }
 0x211   : > { %v1003_v37 = vrot.slane %v1002_v35, 1  ;;  %v1031_v38 = vadd.f32 %v1030_v36, %v1029_v34 }
 0x213   : > { %v1004_v39 = vadd.f32 %v1003_v37, %v1002_v35  ;;  %v1032_v40 = vrot.slane %v1031_v38, 1 }
 0x215   : > { %v1033_v41 = vadd.f32 %v1032_v40, %v1031_v38  ;;  %1034 = vst.msk [vmem:[%s307_s26] sm:$0x1] %vm395_vm2, %v1004_v39 }
 0x217   : > { %1035 = vst.msk [vmem:[%s307_s26 + $0x1] sm:$0x1] %vm395_vm2, %v1033_v41 }
 0x218 PF: > { %s17_s23 = sadd.s32 1, %s1324_s23   ;;  %s1691_s21 = smov %s1320_s22 }
 0x219   : > { %p14_p5 = scmp.ge.s32.totalorder %s17_s23, 4   ;;  %s1692_s22 = smov %s1694_s24 }
 0x21b   :  { %16 = sbr.rel (!%p14_p5) target bundleno = 2 (0x2), region = 88 }

</bundles_post_ra>
